<compile_context>
chip_gen: v5e
topology: v5e:2x2
jax: 0.10.0
libtpu: 0.0.40
codegen_flags: <defaults>
</compile_context>

<pallas_src>
import functools

import jax
import jax.numpy as jnp
import numpy as np
from jax.experimental import pallas as pl
from jax.experimental.pallas import tpu as pltpu


def spatial_attention_kernel(x_ref, w_ref, mask_ref, o_ref,
                             sum_acc, max_acc, sum_pad, max_pad, *, K, P, W):
    # x_ref    : (TN, TC, HW) VMEM  — TN samples x TC channels, lane-dense HW
    # w_ref    : (2*K*K,)     SMEM  — [avg-plane weights * 1/C | max-plane weights]
    # mask_ref : (K, HW)      VMEM  — per-kx column masks (0/1 f32)
    # o_ref    : (TN, 1, HW)  VMEM  — lane-dense output slab
    # sum_acc  : (TN, HW)     VMEM f32 — running channel sum (lane-dense)
    # max_acc  : (TN, HW)     VMEM f32 — running channel max (lane-dense)
    # sum_pad  : (TN, L)      VMEM f32 — flat zero-bordered avg-plane (finalize only)
    # max_pad  : (TN, L)      VMEM f32 — flat zero-bordered max-plane (finalize only)
    c_idx = pl.program_id(1)
    n_c = pl.num_programs(1)
    HW = sum_acc.shape[-1]
    off = P * W + P                      # interior offset inside the flat pad

    # Hot loop: lane-dense channel reduction.  Separate reads so each load has
    # a single consumer and can be streamed/fused with its reduction.
    chunk_sum = jnp.sum(x_ref[...].astype(jnp.float32), axis=1)   # (TN, HW)
    chunk_max = jnp.max(x_ref[...], axis=1).astype(jnp.float32)   # (TN, HW)

    @pl.when(c_idx == 0)
    def _init():
        sum_acc[...] = chunk_sum
        max_acc[...] = chunk_max
        # Zero borders once per batch block; interior is overwritten in
        # finalize.  (Done at c==0 of every batch block so each megacore's
        # private scratch is initialized.)
        sum_pad[...] = jnp.zeros_like(sum_pad)
        max_pad[...] = jnp.zeros_like(max_pad)

    @pl.when(c_idx > 0)
    def _accumulate():
        sum_acc[...] = sum_acc[...] + chunk_sum
        max_acc[...] = jnp.maximum(max_acc[...], chunk_max)

    @pl.when(c_idx == n_c - 1)
    def _finalize():
        # One misaligned interior write per sample block (amortized), instead
        # of one per channel step.
        sum_pad[:, off:off + HW] = sum_acc[...]
        max_pad[:, off:off + HW] = max_acc[...]

        acc = jnp.zeros(sum_acc.shape, jnp.float32)
        for kx in range(K):
            dx = kx - P
            part = jnp.zeros(sum_acc.shape, jnp.float32)
            for ky in range(K):
                start = off + (ky - P) * W + dx        # static flat offset
                w_a = w_ref[ky * K + kx]               # scalar from SMEM
                w_m = w_ref[K * K + ky * K + kx]
                # Shifted windows read straight from the VMEM refs.
                part = part + (w_a * sum_pad[:, start:start + HW]
                               + w_m * max_pad[:, start:start + HW])
            # Column mask zeroes row-boundary wrap-around for this kx.
            acc = acc + mask_ref[kx:kx + 1, :] * part
        o_ref[:, 0, :] = jax.nn.sigmoid(acc).astype(o_ref.dtype)


def _largest_divisor_leq(n, cap):
    cap = max(1, min(n, cap))
    for d in range(cap, 0, -1):
        if n % d == 0:
            return d
    return 1


def _pick_tiles(N, C, HW, itemsize, budget_bytes):
    """Pick (TN, TC).  TC is either C or a multiple of 8 dividing C so the
    (TC, HW) trailing block dims stay (8, 128)-legal."""
    per_channel = max(1, HW * itemsize)
    sample_bytes = C * per_channel
    if sample_bytes <= budget_bytes:
        # Whole channel axis per step; batch several samples per grid step to
        # amortize per-step overhead and densify the finalize / output store.
        cap = min(8, budget_bytes // sample_bytes)
        return _largest_divisor_leq(N, cap), C
    max_tc = budget_bytes // per_channel
    tc = 0
    for d in range(8, C, 8):
        if C % d == 0 and d <= max_tc and d > tc:
            tc = d
    if tc == 0:
        # TODO(synk): mask tail channel tiles for awkward C; realistic CBAM
        # channel counts are multiples of 8 so this fallback is rarely hit.
        tc = C
    return 1, tc


def spatial_attention(x, weight, *, kernel_size=7, block_budget_bytes=8 << 20):
    """x: (N, C, H, W), weight: (1, 2, K, K) -> (N, 1, H, W) attention map."""
    assert kernel_size in (3, 7), "kernel size must be 3 or 7"
    N, C, H, W = x.shape
    K = kernel_size
    P = 3 if K == 7 else 1
    HW = H * W
    L = HW + 2 * (P * W + P)             # flat plane with zero borders

    TN, TC = _pick_tiles(N, C, HW, jnp.dtype(x.dtype).itemsize, block_budget_bytes)
    n_b, n_c = N // TN, C // TC

    # Free, metadata-only reshape to a lane-dense layout.
    x_flat = x.reshape(N, C, HW)

    # Fold the mean's 1/C into the avg-plane weights (plane 0); the kernel then
    # accumulates a plain channel sum.
    w = weight.astype(jnp.float32).reshape(2, K * K)
    w = w * jnp.array([[1.0 / C], [1.0]], dtype=jnp.float32)
    w_flat = w.reshape(-1)                                # (2*K*K,)

    # Per-kx column masks: zero out contributions whose x + (kx - P) falls
    # outside [0, W) (row-boundary wrap-around in the flat layout).
    col = jnp.arange(HW, dtype=jnp.int32) % W
    col_masks = jnp.stack(
        [((col + (kx - P) >= 0) & (col + (kx - P) < W)).astype(jnp.float32)
         for kx in range(K)])                             # (K, HW)

    kernel = functools.partial(spatial_attention_kernel, K=K, P=P, W=W)
    out = pl.pallas_call(
        kernel,
        out_shape=jax.ShapeDtypeStruct((N, 1, HW), x.dtype),
        grid=(n_b, n_c),
        in_specs=[
            pl.BlockSpec((TN, TC, HW), lambda n, c: (n, c, 0)),
            pl.BlockSpec(memory_space=pltpu.MemorySpace.SMEM),
            pl.BlockSpec((K, HW), lambda n, c: (0, 0)),
        ],
        out_specs=pl.BlockSpec((TN, 1, HW), lambda n, c: (n, 0, 0)),
        scratch_shapes=[
            pltpu.VMEM((TN, HW), jnp.float32),   # running channel sum
            pltpu.VMEM((TN, HW), jnp.float32),   # running channel max
            pltpu.VMEM((TN, L), jnp.float32),    # flat zero-bordered avg plane
            pltpu.VMEM((TN, L), jnp.float32),    # flat zero-bordered max plane
        ],
        compiler_params=pltpu.CompilerParams(
            dimension_semantics=("parallel", "arbitrary"),
            vmem_limit_bytes=48 << 20),
    )(x_flat, w_flat, col_masks)
    return out.reshape(N, 1, H, W)


def _reference(x, weight, kernel_size=7):
    # Pure-JAX reference mirroring the PyTorch module.
    P = 3 if kernel_size == 7 else 1
    avg = jnp.mean(x, axis=1, keepdims=True)
    mx = jnp.max(x, axis=1, keepdims=True)
    cat = jnp.concatenate([avg, mx], axis=1)              # (N, 2, H, W)
    y = jax.lax.conv_general_dilated(
        cat, weight, window_strides=(1, 1), padding=((P, P), (P, P)),
        dimension_numbers=("NCHW", "OIHW", "NCHW"))
    return jax.nn.sigmoid(y)


if __name__ == "__main__":
    key = jax.random.PRNGKey(0)
    kx_key, kw_key = jax.random.split(key)

    N, C, H, W = 2, 4, 16, 16
    K = 7

    x = jax.random.normal(kx_key, (N, C, H, W), dtype=jnp.float32)
    # Deterministic conv weight init (Conv2d(2, 1, 7, bias=False) -> (1, 2, 7, 7)).
    fan_in = 2 * K * K
    bound = 1.0 / np.sqrt(fan_in)
    weight = jax.random.uniform(kw_key, (1, 2, K, K), dtype=jnp.float32,
                                minval=-bound, maxval=bound)

    out = spatial_attention(x, weight, kernel_size=K)
    out = jax.block_until_ready(out)

    ref = jax.block_until_ready(_reference(x, weight, kernel_size=K))
    np.testing.assert_allclose(np.asarray(out), np.asarray(ref),
                               rtol=1e-5, atol=1e-5)

    print("KERNEL_OK")
</pallas_src>

<mosaic_0001>
module attributes {stable_mosaic.version = 11 : i64} {
  func.func @spatial_attention_kernel(%arg0: i32, %arg1: i32, %arg2: memref<2x4x256xf32, #tpu.memory_space<vmem>>, %arg3: memref<98xf32, #tpu.memory_space<smem>>, %arg4: memref<7x256xf32, #tpu.memory_space<vmem>>, %arg5: memref<2x1x256xf32, #tpu.memory_space<vmem>>, %arg6: memref<2x256xf32, #tpu.memory_space<vmem>>, %arg7: memref<2x256xf32, #tpu.memory_space<vmem>>, %arg8: memref<2x358xf32, #tpu.memory_space<vmem>>, %arg9: memref<2x358xf32, #tpu.memory_space<vmem>>) attributes {dimension_semantics = [#tpu.dimension_semantics<parallel>, #tpu.dimension_semantics<arbitrary>], iteration_bounds = array<i64: 1, 1>, scalar_prefetch = 0 : i64, scratch_operands = 4 : i64, tpu.core_type = #tpu.core_type<tc>, window_params = [{transform_indices = @transform_0, window_bounds = array<i64: 2, 4, 256>}, {transform_indices = @transform_1, window_bounds = array<i64: 98>}, {pipeline_mode = #tpu.pipeline_mode<synchronous>, transform_indices = @transform_2, window_bounds = array<i64: 7, 256>}, {transform_indices = @transform_3, window_bounds = array<i64: 2, 1, 256>}]} {
    %c0 = arith.constant 0 : index
    %c0_0 = arith.constant 0 : index
    %c0_1 = arith.constant 0 : index
    %0 = vector.load %arg2[%c0, %c0_0, %c0_1] : memref<2x4x256xf32, #tpu.memory_space<vmem>>, vector<2x4x256xf32>
    %cst = arith.constant dense<0.000000e+00> : vector<2x256xf32>
    %1 = vector.multi_reduction <add>, %0, %cst [1] : vector<2x4x256xf32> to vector<2x256xf32>
    %c0_2 = arith.constant 0 : index
    %c0_3 = arith.constant 0 : index
    %c0_4 = arith.constant 0 : index
    %2 = vector.load %arg2[%c0_2, %c0_3, %c0_4] : memref<2x4x256xf32, #tpu.memory_space<vmem>>, vector<2x4x256xf32>
    %cst_5 = arith.constant dense<0xFF800000> : vector<2x256xf32>
    %3 = vector.multi_reduction <maximumf>, %2, %cst_5 [1] : vector<2x4x256xf32> to vector<2x256xf32>
    %c0_i32 = arith.constant 0 : i32
    %4 = arith.cmpi eq, %arg1, %c0_i32 : i32
    %5 = arith.extui %4 : i1 to i32
    %c0_i32_6 = arith.constant 0 : i32
    %6 = arith.cmpi ne, %5, %c0_i32_6 : i32
    scf.if %6 {
      %c0_11 = arith.constant 0 : index
      %c0_12 = arith.constant 0 : index
      %13 = vector.load %arg6[%c0_11, %c0_12] : memref<2x256xf32, #tpu.memory_space<vmem>>, vector<2x256xf32>
      tpu.vector_store %arg6[%c0_11, %c0_12], %1 {strides = array<i32>} : memref<2x256xf32, #tpu.memory_space<vmem>>, vector<2x256xf32>,
      %c0_13 = arith.constant 0 : index
      %c0_14 = arith.constant 0 : index
      %14 = vector.load %arg7[%c0_13, %c0_14] : memref<2x256xf32, #tpu.memory_space<vmem>>, vector<2x256xf32>
      tpu.vector_store %arg7[%c0_13, %c0_14], %3 {strides = array<i32>} : memref<2x256xf32, #tpu.memory_space<vmem>>, vector<2x256xf32>,
      %cst_15 = arith.constant 0.000000e+00 : f32
      %15 = vector.broadcast %cst_15 : f32 to vector<2x358xf32>
      %c0_16 = arith.constant 0 : index
      %c0_17 = arith.constant 0 : index
      %16 = vector.load %arg8[%c0_16, %c0_17] : memref<2x358xf32, #tpu.memory_space<vmem>>, vector<2x358xf32>
      tpu.vector_store %arg8[%c0_16, %c0_17], %15 {strides = array<i32>} : memref<2x358xf32, #tpu.memory_space<vmem>>, vector<2x358xf32>,
      %cst_18 = arith.constant 0.000000e+00 : f32
      %17 = vector.broadcast %cst_18 : f32 to vector<2x358xf32>
      %c0_19 = arith.constant 0 : index
      %c0_20 = arith.constant 0 : index
      %18 = vector.load %arg9[%c0_19, %c0_20] : memref<2x358xf32, #tpu.memory_space<vmem>>, vector<2x358xf32>
      tpu.vector_store %arg9[%c0_19, %c0_20], %17 {strides = array<i32>} : memref<2x358xf32, #tpu.memory_space<vmem>>, vector<2x358xf32>,
    } else {
    }
    %c0_i32_7 = arith.constant 0 : i32
    %7 = arith.cmpi sgt, %arg1, %c0_i32_7 : i32
    %8 = arith.extui %7 : i1 to i32
    %c0_i32_8 = arith.constant 0 : i32
    %9 = arith.cmpi ne, %8, %c0_i32_8 : i32
    scf.if %9 {
      %c0_11 = arith.constant 0 : index
      %c0_12 = arith.constant 0 : index
      %13 = vector.load %arg6[%c0_11, %c0_12] : memref<2x256xf32, #tpu.memory_space<vmem>>, vector<2x256xf32>
      %14 = arith.addf %13, %1 : vector<2x256xf32>
      %c0_13 = arith.constant 0 : index
      %c0_14 = arith.constant 0 : index
      %15 = vector.load %arg6[%c0_13, %c0_14] : memref<2x256xf32, #tpu.memory_space<vmem>>, vector<2x256xf32>
      tpu.vector_store %arg6[%c0_13, %c0_14], %14 {strides = array<i32>} : memref<2x256xf32, #tpu.memory_space<vmem>>, vector<2x256xf32>,
      %c0_15 = arith.constant 0 : index
      %c0_16 = arith.constant 0 : index
      %16 = vector.load %arg7[%c0_15, %c0_16] : memref<2x256xf32, #tpu.memory_space<vmem>>, vector<2x256xf32>
      %17 = arith.maximumf %16, %3 : vector<2x256xf32>
      %c0_17 = arith.constant 0 : index
      %c0_18 = arith.constant 0 : index
      %18 = vector.load %arg7[%c0_17, %c0_18] : memref<2x256xf32, #tpu.memory_space<vmem>>, vector<2x256xf32>
      tpu.vector_store %arg7[%c0_17, %c0_18], %17 {strides = array<i32>} : memref<2x256xf32, #tpu.memory_space<vmem>>, vector<2x256xf32>,
    } else {
    }
    %c0_i32_9 = arith.constant 0 : i32
    %10 = arith.cmpi eq, %arg1, %c0_i32_9 : i32
    %11 = arith.extui %10 : i1 to i32
    %c0_i32_10 = arith.constant 0 : i32
    %12 = arith.cmpi ne, %11, %c0_i32_10 : i32
    scf.if %12 {
      %c0_11 = arith.constant 0 : index
      %c0_12 = arith.constant 0 : index
      %13 = vector.load %arg6[%c0_11, %c0_12] : memref<2x256xf32, #tpu.memory_space<vmem>>, vector<2x256xf32>
      %c0_13 = arith.constant 0 : index
      %c51 = arith.constant 51 : index
      %14 = vector.load %arg8[%c0_13, %c51] : memref<2x358xf32, #tpu.memory_space<vmem>>, vector<2x256xf32>
      tpu.vector_store %arg8[%c0_13, %c51], %13 {strides = array<i32>} : memref<2x358xf32, #tpu.memory_space<vmem>>, vector<2x256xf32>,
      %c0_14 = arith.constant 0 : index
      %c0_15 = arith.constant 0 : index
      %15 = vector.load %arg7[%c0_14, %c0_15] : memref<2x256xf32, #tpu.memory_space<vmem>>, vector<2x256xf32>
      %c0_16 = arith.constant 0 : index
      %c51_17 = arith.constant 51 : index
      %16 = vector.load %arg9[%c0_16, %c51_17] : memref<2x358xf32, #tpu.memory_space<vmem>>, vector<2x256xf32>
      tpu.vector_store %arg9[%c0_16, %c51_17], %15 {strides = array<i32>} : memref<2x358xf32, #tpu.memory_space<vmem>>, vector<2x256xf32>,
      %cst_18 = arith.constant 0.000000e+00 : f32
      %17 = vector.broadcast %cst_18 : f32 to vector<2x256xf32>
      %cst_19 = arith.constant 0.000000e+00 : f32
      %18 = vector.broadcast %cst_19 : f32 to vector<2x256xf32>
      %c0_20 = arith.constant 0 : index
      %19 = memref.load %arg3[%c0_20] : memref<98xf32, #tpu.memory_space<smem>>
      %c49 = arith.constant 49 : index
      %20 = memref.load %arg3[%c49] : memref<98xf32, #tpu.memory_space<smem>>
      %c0_21 = arith.constant 0 : index
      %c0_22 = arith.constant 0 : index
      %21 = vector.load %arg8[%c0_21, %c0_22] : memref<2x358xf32, #tpu.memory_space<vmem>>, vector<2x256xf32>
      %22 = vector.broadcast %19 : f32 to vector<2x256xf32>
      %23 = arith.mulf %22, %21 : vector<2x256xf32>
      %c0_23 = arith.constant 0 : index
      %c0_24 = arith.constant 0 : index
      %24 = vector.load %arg9[%c0_23, %c0_24] : memref<2x358xf32, #tpu.memory_space<vmem>>, vector<2x256xf32>
      %25 = vector.broadcast %20 : f32 to vector<2x256xf32>
      %26 = arith.mulf %25, %24 : vector<2x256xf32>
      %27 = arith.addf %23, %26 : vector<2x256xf32>
      %28 = arith.addf %18, %27 : vector<2x256xf32>
      %c7 = arith.constant 7 : index
      %29 = memref.load %arg3[%c7] : memref<98xf32, #tpu.memory_space<smem>>
      %c56 = arith.constant 56 : index
      %30 = memref.load %arg3[%c56] : memref<98xf32, #tpu.memory_space<smem>>
      %c0_25 = arith.constant 0 : index
      %c16 = arith.constant 16 : index
      %31 = vector.load %arg8[%c0_25, %c16] : memref<2x358xf32, #tpu.memory_space<vmem>>, vector<2x256xf32>
      %32 = vector.broadcast %29 : f32 to vector<2x256xf32>
      %33 = arith.mulf %32, %31 : vector<2x256xf32>
      %c0_26 = arith.constant 0 : index
      %c16_27 = arith.constant 16 : index
      %34 = vector.load %arg9[%c0_26, %c16_27] : memref<2x358xf32, #tpu.memory_space<vmem>>, vector<2x256xf32>
      %35 = vector.broadcast %30 : f32 to vector<2x256xf32>
      %36 = arith.mulf %35, %34 : vector<2x256xf32>
      %37 = arith.addf %33, %36 : vector<2x256xf32>
      %38 = arith.addf %28, %37 : vector<2x256xf32>
      %c14 = arith.constant 14 : index
      %39 = memref.load %arg3[%c14] : memref<98xf32, #tpu.memory_space<smem>>
      %c63 = arith.constant 63 : index
      %40 = memref.load %arg3[%c63] : memref<98xf32, #tpu.memory_space<smem>>
      %c0_28 = arith.constant 0 : index
      %c32 = arith.constant 32 : index
      %41 = vector.load %arg8[%c0_28, %c32] : memref<2x358xf32, #tpu.memory_space<vmem>>, vector<2x256xf32>
      %42 = vector.broadcast %39 : f32 to vector<2x256xf32>
      %43 = arith.mulf %42, %41 : vector<2x256xf32>
      %c0_29 = arith.constant 0 : index
      %c32_30 = arith.constant 32 : index
      %44 = vector.load %arg9[%c0_29, %c32_30] : memref<2x358xf32, #tpu.memory_space<vmem>>, vector<2x256xf32>
      %45 = vector.broadcast %40 : f32 to vector<2x256xf32>
      %46 = arith.mulf %45, %44 : vector<2x256xf32>
      %47 = arith.addf %43, %46 : vector<2x256xf32>
      %48 = arith.addf %38, %47 : vector<2x256xf32>
      %c21 = arith.constant 21 : index
      %49 = memref.load %arg3[%c21] : memref<98xf32, #tpu.memory_space<smem>>
      %c70 = arith.constant 70 : index
      %50 = memref.load %arg3[%c70] : memref<98xf32, #tpu.memory_space<smem>>
      %c0_31 = arith.constant 0 : index
      %c48 = arith.constant 48 : index
      %51 = vector.load %arg8[%c0_31, %c48] : memref<2x358xf32, #tpu.memory_space<vmem>>, vector<2x256xf32>
      %52 = vector.broadcast %49 : f32 to vector<2x256xf32>
      %53 = arith.mulf %52, %51 : vector<2x256xf32>
      %c0_32 = arith.constant 0 : index
      %c48_33 = arith.constant 48 : index
      %54 = vector.load %arg9[%c0_32, %c48_33] : memref<2x358xf32, #tpu.memory_space<vmem>>, vector<2x256xf32>
      %55 = vector.broadcast %50 : f32 to vector<2x256xf32>
      %56 = arith.mulf %55, %54 : vector<2x256xf32>
      %57 = arith.addf %53, %56 : vector<2x256xf32>
      %58 = arith.addf %48, %57 : vector<2x256xf32>
      %c28 = arith.constant 28 : index
      %59 = memref.load %arg3[%c28] : memref<98xf32, #tpu.memory_space<smem>>
      %c77 = arith.constant 77 : index
      %60 = memref.load %arg3[%c77] : memref<98xf32, #tpu.memory_space<smem>>
      %c0_34 = arith.constant 0 : index
      %c64 = arith.constant 64 : index
      %61 = vector.load %arg8[%c0_34, %c64] : memref<2x358xf32, #tpu.memory_space<vmem>>, vector<2x256xf32>
      %62 = vector.broadcast %59 : f32 to vector<2x256xf32>
      %63 = arith.mulf %62, %61 : vector<2x256xf32>
      %c0_35 = arith.constant 0 : index
      %c64_36 = arith.constant 64 : index
      %64 = vector.load %arg9[%c0_35, %c64_36] : memref<2x358xf32, #tpu.memory_space<vmem>>, vector<2x256xf32>
      %65 = vector.broadcast %60 : f32 to vector<2x256xf32>
      %66 = arith.mulf %65, %64 : vector<2x256xf32>
      %67 = arith.addf %63, %66 : vector<2x256xf32>
      %68 = arith.addf %58, %67 : vector<2x256xf32>
      %c35 = arith.constant 35 : index
      %69 = memref.load %arg3[%c35] : memref<98xf32, #tpu.memory_space<smem>>
      %c84 = arith.constant 84 : index
      %70 = memref.load %arg3[%c84] : memref<98xf32, #tpu.memory_space<smem>>
      %c0_37 = arith.constant 0 : index
      %c80 = arith.constant 80 : index
      %71 = vector.load %arg8[%c0_37, %c80] : memref<2x358xf32, #tpu.memory_space<vmem>>, vector<2x256xf32>
      %72 = vector.broadcast %69 : f32 to vector<2x256xf32>
      %73 = arith.mulf %72, %71 : vector<2x256xf32>
      %c0_38 = arith.constant 0 : index
      %c80_39 = arith.constant 80 : index
      %74 = vector.load %arg9[%c0_38, %c80_39] : memref<2x358xf32, #tpu.memory_space<vmem>>, vector<2x256xf32>
      %75 = vector.broadcast %70 : f32 to vector<2x256xf32>
      %76 = arith.mulf %75, %74 : vector<2x256xf32>
      %77 = arith.addf %73, %76 : vector<2x256xf32>
      %78 = arith.addf %68, %77 : vector<2x256xf32>
      %c42 = arith.constant 42 : index
      %79 = memref.load %arg3[%c42] : memref<98xf32, #tpu.memory_space<smem>>
      %c91 = arith.constant 91 : index
      %80 = memref.load %arg3[%c91] : memref<98xf32, #tpu.memory_space<smem>>
      %c0_40 = arith.constant 0 : index
      %c96 = arith.constant 96 : index
      %81 = vector.load %arg8[%c0_40, %c96] : memref<2x358xf32, #tpu.memory_space<vmem>>, vector<2x256xf32>
      %82 = vector.broadcast %79 : f32 to vector<2x256xf32>
      %83 = arith.mulf %82, %81 : vector<2x256xf32>
      %c0_41 = arith.constant 0 : index
      %c96_42 = arith.constant 96 : index
      %84 = vector.load %arg9[%c0_41, %c96_42] : memref<2x358xf32, #tpu.memory_space<vmem>>, vector<2x256xf32>
      %85 = vector.broadcast %80 : f32 to vector<2x256xf32>
      %86 = arith.mulf %85, %84 : vector<2x256xf32>
      %87 = arith.addf %83, %86 : vector<2x256xf32>
      %88 = arith.addf %78, %87 : vector<2x256xf32>
      %c0_43 = arith.constant 0 : index
      %c0_44 = arith.constant 0 : index
      %89 = vector.load %arg4[%c0_43, %c0_44] : memref<7x256xf32, #tpu.memory_space<vmem>>, vector<1x256xf32>
      %90 = vector.broadcast %89 : vector<1x256xf32> to vector<2x256xf32>
      %91 = arith.mulf %90, %88 : vector<2x256xf32>
      %92 = arith.addf %17, %91 : vector<2x256xf32>
      %cst_45 = arith.constant 0.000000e+00 : f32
      %93 = vector.broadcast %cst_45 : f32 to vector<2x256xf32>
      %c1 = arith.constant 1 : index
      %94 = memref.load %arg3[%c1] : memref<98xf32, #tpu.memory_space<smem>>
      %c50 = arith.constant 50 : index
      %95 = memref.load %arg3[%c50] : memref<98xf32, #tpu.memory_space<smem>>
      %c0_46 = arith.constant 0 : index
      %c1_47 = arith.constant 1 : index
      %96 = vector.load %arg8[%c0_46, %c1_47] : memref<2x358xf32, #tpu.memory_space<vmem>>, vector<2x256xf32>
      %97 = vector.broadcast %94 : f32 to vector<2x256xf32>
      %98 = arith.mulf %97, %96 : vector<2x256xf32>
      %c0_48 = arith.constant 0 : index
      %c1_49 = arith.constant 1 : index
      %99 = vector.load %arg9[%c0_48, %c1_49] : memref<2x358xf32, #tpu.memory_space<vmem>>, vector<2x256xf32>
      %100 = vector.broadcast %95 : f32 to vector<2x256xf32>
      %101 = arith.mulf %100, %99 : vector<2x256xf32>
      %102 = arith.addf %98, %101 : vector<2x256xf32>
      %103 = arith.addf %93, %102 : vector<2x256xf32>
      %c8 = arith.constant 8 : index
      %104 = memref.load %arg3[%c8] : memref<98xf32, #tpu.memory_space<smem>>
      %c57 = arith.constant 57 : index
      %105 = memref.load %arg3[%c57] : memref<98xf32, #tpu.memory_space<smem>>
      %c0_50 = arith.constant 0 : index
      %c17 = arith.constant 17 : index
      %106 = vector.load %arg8[%c0_50, %c17] : memref<2x358xf32, #tpu.memory_space<vmem>>, vector<2x256xf32>
      %107 = vector.broadcast %104 : f32 to vector<2x256xf32>
      %108 = arith.mulf %107, %106 : vector<2x256xf32>
      %c0_51 = arith.constant 0 : index
      %c17_52 = arith.constant 17 : index
      %109 = vector.load %arg9[%c0_51, %c17_52] : memref<2x358xf32, #tpu.memory_space<vmem>>, vector<2x256xf32>
      %110 = vector.broadcast %105 : f32 to vector<2x256xf32>
      %111 = arith.mulf %110, %109 : vector<2x256xf32>
      %112 = arith.addf %108, %111 : vector<2x256xf32>
      %113 = arith.addf %103, %112 : vector<2x256xf32>
      %c15 = arith.constant 15 : index
      %114 = memref.load %arg3[%c15] : memref<98xf32, #tpu.memory_space<smem>>
      %c64_53 = arith.constant 64 : index
      %115 = memref.load %arg3[%c64_53] : memref<98xf32, #tpu.memory_space<smem>>
      %c0_54 = arith.constant 0 : index
      %c33 = arith.constant 33 : index
      %116 = vector.load %arg8[%c0_54, %c33] : memref<2x358xf32, #tpu.memory_space<vmem>>, vector<2x256xf32>
      %117 = vector.broadcast %114 : f32 to vector<2x256xf32>
      %118 = arith.mulf %117, %116 : vector<2x256xf32>
      %c0_55 = arith.constant 0 : index
      %c33_56 = arith.constant 33 : index
      %119 = vector.load %arg9[%c0_55, %c33_56] : memref<2x358xf32, #tpu.memory_space<vmem>>, vector<2x256xf32>
      %120 = vector.broadcast %115 : f32 to vector<2x256xf32>
      %121 = arith.mulf %120, %119 : vector<2x256xf32>
      %122 = arith.addf %118, %121 : vector<2x256xf32>
      %123 = arith.addf %113, %122 : vector<2x256xf32>
      %c22 = arith.constant 22 : index
      %124 = memref.load %arg3[%c22] : memref<98xf32, #tpu.memory_space<smem>>
      %c71 = arith.constant 71 : index
      %125 = memref.load %arg3[%c71] : memref<98xf32, #tpu.memory_space<smem>>
      %c0_57 = arith.constant 0 : index
      %c49_58 = arith.constant 49 : index
      %126 = vector.load %arg8[%c0_57, %c49_58] : memref<2x358xf32, #tpu.memory_space<vmem>>, vector<2x256xf32>
      %127 = vector.broadcast %124 : f32 to vector<2x256xf32>
      %128 = arith.mulf %127, %126 : vector<2x256xf32>
      %c0_59 = arith.constant 0 : index
      %c49_60 = arith.constant 49 : index
      %129 = vector.load %arg9[%c0_59, %c49_60] : memref<2x358xf32, #tpu.memory_space<vmem>>, vector<2x256xf32>
      %130 = vector.broadcast %125 : f32 to vector<2x256xf32>
      %131 = arith.mulf %130, %129 : vector<2x256xf32>
      %132 = arith.addf %128, %131 : vector<2x256xf32>
      %133 = arith.addf %123, %132 : vector<2x256xf32>
      %c29 = arith.constant 29 : index
      %134 = memref.load %arg3[%c29] : memref<98xf32, #tpu.memory_space<smem>>
      %c78 = arith.constant 78 : index
      %135 = memref.load %arg3[%c78] : memref<98xf32, #tpu.memory_space<smem>>
      %c0_61 = arith.constant 0 : index
      %c65 = arith.constant 65 : index
      %136 = vector.load %arg8[%c0_61, %c65] : memref<2x358xf32, #tpu.memory_space<vmem>>, vector<2x256xf32>
      %137 = vector.broadcast %134 : f32 to vector<2x256xf32>
      %138 = arith.mulf %137, %136 : vector<2x256xf32>
      %c0_62 = arith.constant 0 : index
      %c65_63 = arith.constant 65 : index
      %139 = vector.load %arg9[%c0_62, %c65_63] : memref<2x358xf32, #tpu.memory_space<vmem>>, vector<2x256xf32>
      %140 = vector.broadcast %135 : f32 to vector<2x256xf32>
      %141 = arith.mulf %140, %139 : vector<2x256xf32>
      %142 = arith.addf %138, %141 : vector<2x256xf32>
      %143 = arith.addf %133, %142 : vector<2x256xf32>
      %c36 = arith.constant 36 : index
      %144 = memref.load %arg3[%c36] : memref<98xf32, #tpu.memory_space<smem>>
      %c85 = arith.constant 85 : index
      %145 = memref.load %arg3[%c85] : memref<98xf32, #tpu.memory_space<smem>>
      %c0_64 = arith.constant 0 : index
      %c81 = arith.constant 81 : index
      %146 = vector.load %arg8[%c0_64, %c81] : memref<2x358xf32, #tpu.memory_space<vmem>>, vector<2x256xf32>
      %147 = vector.broadcast %144 : f32 to vector<2x256xf32>
      %148 = arith.mulf %147, %146 : vector<2x256xf32>
      %c0_65 = arith.constant 0 : index
      %c81_66 = arith.constant 81 : index
      %149 = vector.load %arg9[%c0_65, %c81_66] : memref<2x358xf32, #tpu.memory_space<vmem>>, vector<2x256xf32>
      %150 = vector.broadcast %145 : f32 to vector<2x256xf32>
      %151 = arith.mulf %150, %149 : vector<2x256xf32>
      %152 = arith.addf %148, %151 : vector<2x256xf32>
      %153 = arith.addf %143, %152 : vector<2x256xf32>
      %c43 = arith.constant 43 : index
      %154 = memref.load %arg3[%c43] : memref<98xf32, #tpu.memory_space<smem>>
      %c92 = arith.constant 92 : index
      %155 = memref.load %arg3[%c92] : memref<98xf32, #tpu.memory_space<smem>>
      %c0_67 = arith.constant 0 : index
      %c97 = arith.constant 97 : index
      %156 = vector.load %arg8[%c0_67, %c97] : memref<2x358xf32, #tpu.memory_space<vmem>>, vector<2x256xf32>
      %157 = vector.broadcast %154 : f32 to vector<2x256xf32>
      %158 = arith.mulf %157, %156 : vector<2x256xf32>
      %c0_68 = arith.constant 0 : index
      %c97_69 = arith.constant 97 : index
      %159 = vector.load %arg9[%c0_68, %c97_69] : memref<2x358xf32, #tpu.memory_space<vmem>>, vector<2x256xf32>
      %160 = vector.broadcast %155 : f32 to vector<2x256xf32>
      %161 = arith.mulf %160, %159 : vector<2x256xf32>
      %162 = arith.addf %158, %161 : vector<2x256xf32>
      %163 = arith.addf %153, %162 : vector<2x256xf32>
      %c1_70 = arith.constant 1 : index
      %c0_71 = arith.constant 0 : index
      %164 = vector.load %arg4[%c1_70, %c0_71] : memref<7x256xf32, #tpu.memory_space<vmem>>, vector<1x256xf32>
      %165 = vector.broadcast %164 : vector<1x256xf32> to vector<2x256xf32>
      %166 = arith.mulf %165, %163 : vector<2x256xf32>
      %167 = arith.addf %92, %166 : vector<2x256xf32>
      %cst_72 = arith.constant 0.000000e+00 : f32
      %168 = vector.broadcast %cst_72 : f32 to vector<2x256xf32>
      %c2 = arith.constant 2 : index
      %169 = memref.load %arg3[%c2] : memref<98xf32, #tpu.memory_space<smem>>
      %c51_73 = arith.constant 51 : index
      %170 = memref.load %arg3[%c51_73] : memref<98xf32, #tpu.memory_space<smem>>
      %c0_74 = arith.constant 0 : index
      %c2_75 = arith.constant 2 : index
      %171 = vector.load %arg8[%c0_74, %c2_75] : memref<2x358xf32, #tpu.memory_space<vmem>>, vector<2x256xf32>
      %172 = vector.broadcast %169 : f32 to vector<2x256xf32>
      %173 = arith.mulf %172, %171 : vector<2x256xf32>
      %c0_76 = arith.constant 0 : index
      %c2_77 = arith.constant 2 : index
      %174 = vector.load %arg9[%c0_76, %c2_77] : memref<2x358xf32, #tpu.memory_space<vmem>>, vector<2x256xf32>
      %175 = vector.broadcast %170 : f32 to vector<2x256xf32>
      %176 = arith.mulf %175, %174 : vector<2x256xf32>
      %177 = arith.addf %173, %176 : vector<2x256xf32>
      %178 = arith.addf %168, %177 : vector<2x256xf32>
      %c9 = arith.constant 9 : index
      %179 = memref.load %arg3[%c9] : memref<98xf32, #tpu.memory_space<smem>>
      %c58 = arith.constant 58 : index
      %180 = memref.load %arg3[%c58] : memref<98xf32, #tpu.memory_space<smem>>
      %c0_78 = arith.constant 0 : index
      %c18 = arith.constant 18 : index
      %181 = vector.load %arg8[%c0_78, %c18] : memref<2x358xf32, #tpu.memory_space<vmem>>, vector<2x256xf32>
      %182 = vector.broadcast %179 : f32 to vector<2x256xf32>
      %183 = arith.mulf %182, %181 : vector<2x256xf32>
      %c0_79 = arith.constant 0 : index
      %c18_80 = arith.constant 18 : index
      %184 = vector.load %arg9[%c0_79, %c18_80] : memref<2x358xf32, #tpu.memory_space<vmem>>, vector<2x256xf32>
      %185 = vector.broadcast %180 : f32 to vector<2x256xf32>
      %186 = arith.mulf %185, %184 : vector<2x256xf32>
      %187 = arith.addf %183, %186 : vector<2x256xf32>
      %188 = arith.addf %178, %187 : vector<2x256xf32>
      %c16_81 = arith.constant 16 : index
      %189 = memref.load %arg3[%c16_81] : memref<98xf32, #tpu.memory_space<smem>>
      %c65_82 = arith.constant 65 : index
      %190 = memref.load %arg3[%c65_82] : memref<98xf32, #tpu.memory_space<smem>>
      %c0_83 = arith.constant 0 : index
      %c34 = arith.constant 34 : index
      %191 = vector.load %arg8[%c0_83, %c34] : memref<2x358xf32, #tpu.memory_space<vmem>>, vector<2x256xf32>
      %192 = vector.broadcast %189 : f32 to vector<2x256xf32>
      %193 = arith.mulf %192, %191 : vector<2x256xf32>
      %c0_84 = arith.constant 0 : index
      %c34_85 = arith.constant 34 : index
      %194 = vector.load %arg9[%c0_84, %c34_85] : memref<2x358xf32, #tpu.memory_space<vmem>>, vector<2x256xf32>
      %195 = vector.broadcast %190 : f32 to vector<2x256xf32>
      %196 = arith.mulf %195, %194 : vector<2x256xf32>
      %197 = arith.addf %193, %196 : vector<2x256xf32>
      %198 = arith.addf %188, %197 : vector<2x256xf32>
      %c23 = arith.constant 23 : index
      %199 = memref.load %arg3[%c23] : memref<98xf32, #tpu.memory_space<smem>>
      %c72 = arith.constant 72 : index
      %200 = memref.load %arg3[%c72] : memref<98xf32, #tpu.memory_space<smem>>
      %c0_86 = arith.constant 0 : index
      %c50_87 = arith.constant 50 : index
      %201 = vector.load %arg8[%c0_86, %c50_87] : memref<2x358xf32, #tpu.memory_space<vmem>>, vector<2x256xf32>
      %202 = vector.broadcast %199 : f32 to vector<2x256xf32>
      %203 = arith.mulf %202, %201 : vector<2x256xf32>
      %c0_88 = arith.constant 0 : index
      %c50_89 = arith.constant 50 : index
      %204 = vector.load %arg9[%c0_88, %c50_89] : memref<2x358xf32, #tpu.memory_space<vmem>>, vector<2x256xf32>
      %205 = vector.broadcast %200 : f32 to vector<2x256xf32>
      %206 = arith.mulf %205, %204 : vector<2x256xf32>
      %207 = arith.addf %203, %206 : vector<2x256xf32>
      %208 = arith.addf %198, %207 : vector<2x256xf32>
      %c30 = arith.constant 30 : index
      %209 = memref.load %arg3[%c30] : memref<98xf32, #tpu.memory_space<smem>>
      %c79 = arith.constant 79 : index
      %210 = memref.load %arg3[%c79] : memref<98xf32, #tpu.memory_space<smem>>
      %c0_90 = arith.constant 0 : index
      %c66 = arith.constant 66 : index
      %211 = vector.load %arg8[%c0_90, %c66] : memref<2x358xf32, #tpu.memory_space<vmem>>, vector<2x256xf32>
      %212 = vector.broadcast %209 : f32 to vector<2x256xf32>
      %213 = arith.mulf %212, %211 : vector<2x256xf32>
      %c0_91 = arith.constant 0 : index
      %c66_92 = arith.constant 66 : index
      %214 = vector.load %arg9[%c0_91, %c66_92] : memref<2x358xf32, #tpu.memory_space<vmem>>, vector<2x256xf32>
      %215 = vector.broadcast %210 : f32 to vector<2x256xf32>
      %216 = arith.mulf %215, %214 : vector<2x256xf32>
      %217 = arith.addf %213, %216 : vector<2x256xf32>
      %218 = arith.addf %208, %217 : vector<2x256xf32>
      %c37 = arith.constant 37 : index
      %219 = memref.load %arg3[%c37] : memref<98xf32, #tpu.memory_space<smem>>
      %c86 = arith.constant 86 : index
      %220 = memref.load %arg3[%c86] : memref<98xf32, #tpu.memory_space<smem>>
      %c0_93 = arith.constant 0 : index
      %c82 = arith.constant 82 : index
      %221 = vector.load %arg8[%c0_93, %c82] : memref<2x358xf32, #tpu.memory_space<vmem>>, vector<2x256xf32>
      %222 = vector.broadcast %219 : f32 to vector<2x256xf32>
      %223 = arith.mulf %222, %221 : vector<2x256xf32>
      %c0_94 = arith.constant 0 : index
      %c82_95 = arith.constant 82 : index
      %224 = vector.load %arg9[%c0_94, %c82_95] : memref<2x358xf32, #tpu.memory_space<vmem>>, vector<2x256xf32>
      %225 = vector.broadcast %220 : f32 to vector<2x256xf32>
      %226 = arith.mulf %225, %224 : vector<2x256xf32>
      %227 = arith.addf %223, %226 : vector<2x256xf32>
      %228 = arith.addf %218, %227 : vector<2x256xf32>
      %c44 = arith.constant 44 : index
      %229 = memref.load %arg3[%c44] : memref<98xf32, #tpu.memory_space<smem>>
      %c93 = arith.constant 93 : index
      %230 = memref.load %arg3[%c93] : memref<98xf32, #tpu.memory_space<smem>>
      %c0_96 = arith.constant 0 : index
      %c98 = arith.constant 98 : index
      %231 = vector.load %arg8[%c0_96, %c98] : memref<2x358xf32, #tpu.memory_space<vmem>>, vector<2x256xf32>
      %232 = vector.broadcast %229 : f32 to vector<2x256xf32>
      %233 = arith.mulf %232, %231 : vector<2x256xf32>
      %c0_97 = arith.constant 0 : index
      %c98_98 = arith.constant 98 : index
      %234 = vector.load %arg9[%c0_97, %c98_98] : memref<2x358xf32, #tpu.memory_space<vmem>>, vector<2x256xf32>
      %235 = vector.broadcast %230 : f32 to vector<2x256xf32>
      %236 = arith.mulf %235, %234 : vector<2x256xf32>
      %237 = arith.addf %233, %236 : vector<2x256xf32>
      %238 = arith.addf %228, %237 : vector<2x256xf32>
      %c2_99 = arith.constant 2 : index
      %c0_100 = arith.constant 0 : index
      %239 = vector.load %arg4[%c2_99, %c0_100] : memref<7x256xf32, #tpu.memory_space<vmem>>, vector<1x256xf32>
      %240 = vector.broadcast %239 : vector<1x256xf32> to vector<2x256xf32>
      %241 = arith.mulf %240, %238 : vector<2x256xf32>
      %242 = arith.addf %167, %241 : vector<2x256xf32>
      %cst_101 = arith.constant 0.000000e+00 : f32
      %243 = vector.broadcast %cst_101 : f32 to vector<2x256xf32>
      %c3 = arith.constant 3 : index
      %244 = memref.load %arg3[%c3] : memref<98xf32, #tpu.memory_space<smem>>
      %c52 = arith.constant 52 : index
      %245 = memref.load %arg3[%c52] : memref<98xf32, #tpu.memory_space<smem>>
      %c0_102 = arith.constant 0 : index
      %c3_103 = arith.constant 3 : index
      %246 = vector.load %arg8[%c0_102, %c3_103] : memref<2x358xf32, #tpu.memory_space<vmem>>, vector<2x256xf32>
      %247 = vector.broadcast %244 : f32 to vector<2x256xf32>
      %248 = arith.mulf %247, %246 : vector<2x256xf32>
      %c0_104 = arith.constant 0 : index
      %c3_105 = arith.constant 3 : index
      %249 = vector.load %arg9[%c0_104, %c3_105] : memref<2x358xf32, #tpu.memory_space<vmem>>, vector<2x256xf32>
      %250 = vector.broadcast %245 : f32 to vector<2x256xf32>
      %251 = arith.mulf %250, %249 : vector<2x256xf32>
      %252 = arith.addf %248, %251 : vector<2x256xf32>
      %253 = arith.addf %243, %252 : vector<2x256xf32>
      %c10 = arith.constant 10 : index
      %254 = memref.load %arg3[%c10] : memref<98xf32, #tpu.memory_space<smem>>
      %c59 = arith.constant 59 : index
      %255 = memref.load %arg3[%c59] : memref<98xf32, #tpu.memory_space<smem>>
      %c0_106 = arith.constant 0 : index
      %c19 = arith.constant 19 : index
      %256 = vector.load %arg8[%c0_106, %c19] : memref<2x358xf32, #tpu.memory_space<vmem>>, vector<2x256xf32>
      %257 = vector.broadcast %254 : f32 to vector<2x256xf32>
      %258 = arith.mulf %257, %256 : vector<2x256xf32>
      %c0_107 = arith.constant 0 : index
      %c19_108 = arith.constant 19 : index
      %259 = vector.load %arg9[%c0_107, %c19_108] : memref<2x358xf32, #tpu.memory_space<vmem>>, vector<2x256xf32>
      %260 = vector.broadcast %255 : f32 to vector<2x256xf32>
      %261 = arith.mulf %260, %259 : vector<2x256xf32>
      %262 = arith.addf %258, %261 : vector<2x256xf32>
      %263 = arith.addf %253, %262 : vector<2x256xf32>
      %c17_109 = arith.constant 17 : index
      %264 = memref.load %arg3[%c17_109] : memref<98xf32, #tpu.memory_space<smem>>
      %c66_110 = arith.constant 66 : index
      %265 = memref.load %arg3[%c66_110] : memref<98xf32, #tpu.memory_space<smem>>
      %c0_111 = arith.constant 0 : index
      %c35_112 = arith.constant 35 : index
      %266 = vector.load %arg8[%c0_111, %c35_112] : memref<2x358xf32, #tpu.memory_space<vmem>>, vector<2x256xf32>
      %267 = vector.broadcast %264 : f32 to vector<2x256xf32>
      %268 = arith.mulf %267, %266 : vector<2x256xf32>
      %c0_113 = arith.constant 0 : index
      %c35_114 = arith.constant 35 : index
      %269 = vector.load %arg9[%c0_113, %c35_114] : memref<2x358xf32, #tpu.memory_space<vmem>>, vector<2x256xf32>
      %270 = vector.broadcast %265 : f32 to vector<2x256xf32>
      %271 = arith.mulf %270, %269 : vector<2x256xf32>
      %272 = arith.addf %268, %271 : vector<2x256xf32>
      %273 = arith.addf %263, %272 : vector<2x256xf32>
      %c24 = arith.constant 24 : index
      %274 = memref.load %arg3[%c24] : memref<98xf32, #tpu.memory_space<smem>>
      %c73 = arith.constant 73 : index
      %275 = memref.load %arg3[%c73] : memref<98xf32, #tpu.memory_space<smem>>
      %c0_115 = arith.constant 0 : index
      %c51_116 = arith.constant 51 : index
      %276 = vector.load %arg8[%c0_115, %c51_116] : memref<2x358xf32, #tpu.memory_space<vmem>>, vector<2x256xf32>
      %277 = vector.broadcast %274 : f32 to vector<2x256xf32>
      %278 = arith.mulf %277, %276 : vector<2x256xf32>
      %c0_117 = arith.constant 0 : index
      %c51_118 = arith.constant 51 : index
      %279 = vector.load %arg9[%c0_117, %c51_118] : memref<2x358xf32, #tpu.memory_space<vmem>>, vector<2x256xf32>
      %280 = vector.broadcast %275 : f32 to vector<2x256xf32>
      %281 = arith.mulf %280, %279 : vector<2x256xf32>
      %282 = arith.addf %278, %281 : vector<2x256xf32>
      %283 = arith.addf %273, %282 : vector<2x256xf32>
      %c31 = arith.constant 31 : index
      %284 = memref.load %arg3[%c31] : memref<98xf32, #tpu.memory_space<smem>>
      %c80_119 = arith.constant 80 : index
      %285 = memref.load %arg3[%c80_119] : memref<98xf32, #tpu.memory_space<smem>>
      %c0_120 = arith.constant 0 : index
      %c67 = arith.constant 67 : index
      %286 = vector.load %arg8[%c0_120, %c67] : memref<2x358xf32, #tpu.memory_space<vmem>>, vector<2x256xf32>
      %287 = vector.broadcast %284 : f32 to vector<2x256xf32>
      %288 = arith.mulf %287, %286 : vector<2x256xf32>
      %c0_121 = arith.constant 0 : index
      %c67_122 = arith.constant 67 : index
      %289 = vector.load %arg9[%c0_121, %c67_122] : memref<2x358xf32, #tpu.memory_space<vmem>>, vector<2x256xf32>
      %290 = vector.broadcast %285 : f32 to vector<2x256xf32>
      %291 = arith.mulf %290, %289 : vector<2x256xf32>
      %292 = arith.addf %288, %291 : vector<2x256xf32>
      %293 = arith.addf %283, %292 : vector<2x256xf32>
      %c38 = arith.constant 38 : index
      %294 = memref.load %arg3[%c38] : memref<98xf32, #tpu.memory_space<smem>>
      %c87 = arith.constant 87 : index
      %295 = memref.load %arg3[%c87] : memref<98xf32, #tpu.memory_space<smem>>
      %c0_123 = arith.constant 0 : index
      %c83 = arith.constant 83 : index
      %296 = vector.load %arg8[%c0_123, %c83] : memref<2x358xf32, #tpu.memory_space<vmem>>, vector<2x256xf32>
      %297 = vector.broadcast %294 : f32 to vector<2x256xf32>
      %298 = arith.mulf %297, %296 : vector<2x256xf32>
      %c0_124 = arith.constant 0 : index
      %c83_125 = arith.constant 83 : index
      %299 = vector.load %arg9[%c0_124, %c83_125] : memref<2x358xf32, #tpu.memory_space<vmem>>, vector<2x256xf32>
      %300 = vector.broadcast %295 : f32 to vector<2x256xf32>
      %301 = arith.mulf %300, %299 : vector<2x256xf32>
      %302 = arith.addf %298, %301 : vector<2x256xf32>
      %303 = arith.addf %293, %302 : vector<2x256xf32>
      %c45 = arith.constant 45 : index
      %304 = memref.load %arg3[%c45] : memref<98xf32, #tpu.memory_space<smem>>
      %c94 = arith.constant 94 : index
      %305 = memref.load %arg3[%c94] : memref<98xf32, #tpu.memory_space<smem>>
      %c0_126 = arith.constant 0 : index
      %c99 = arith.constant 99 : index
      %306 = vector.load %arg8[%c0_126, %c99] : memref<2x358xf32, #tpu.memory_space<vmem>>, vector<2x256xf32>
      %307 = vector.broadcast %304 : f32 to vector<2x256xf32>
      %308 = arith.mulf %307, %306 : vector<2x256xf32>
      %c0_127 = arith.constant 0 : index
      %c99_128 = arith.constant 99 : index
      %309 = vector.load %arg9[%c0_127, %c99_128] : memref<2x358xf32, #tpu.memory_space<vmem>>, vector<2x256xf32>
      %310 = vector.broadcast %305 : f32 to vector<2x256xf32>
      %311 = arith.mulf %310, %309 : vector<2x256xf32>
      %312 = arith.addf %308, %311 : vector<2x256xf32>
      %313 = arith.addf %303, %312 : vector<2x256xf32>
      %c3_129 = arith.constant 3 : index
      %c0_130 = arith.constant 0 : index
      %314 = vector.load %arg4[%c3_129, %c0_130] : memref<7x256xf32, #tpu.memory_space<vmem>>, vector<1x256xf32>
      %315 = vector.broadcast %314 : vector<1x256xf32> to vector<2x256xf32>
      %316 = arith.mulf %315, %313 : vector<2x256xf32>
      %317 = arith.addf %242, %316 : vector<2x256xf32>
      %cst_131 = arith.constant 0.000000e+00 : f32
      %318 = vector.broadcast %cst_131 : f32 to vector<2x256xf32>
      %c4 = arith.constant 4 : index
      %319 = memref.load %arg3[%c4] : memref<98xf32, #tpu.memory_space<smem>>
      %c53 = arith.constant 53 : index
      %320 = memref.load %arg3[%c53] : memref<98xf32, #tpu.memory_space<smem>>
      %c0_132 = arith.constant 0 : index
      %c4_133 = arith.constant 4 : index
      %321 = vector.load %arg8[%c0_132, %c4_133] : memref<2x358xf32, #tpu.memory_space<vmem>>, vector<2x256xf32>
      %322 = vector.broadcast %319 : f32 to vector<2x256xf32>
      %323 = arith.mulf %322, %321 : vector<2x256xf32>
      %c0_134 = arith.constant 0 : index
      %c4_135 = arith.constant 4 : index
      %324 = vector.load %arg9[%c0_134, %c4_135] : memref<2x358xf32, #tpu.memory_space<vmem>>, vector<2x256xf32>
      %325 = vector.broadcast %320 : f32 to vector<2x256xf32>
      %326 = arith.mulf %325, %324 : vector<2x256xf32>
      %327 = arith.addf %323, %326 : vector<2x256xf32>
      %328 = arith.addf %318, %327 : vector<2x256xf32>
      %c11 = arith.constant 11 : index
      %329 = memref.load %arg3[%c11] : memref<98xf32, #tpu.memory_space<smem>>
      %c60 = arith.constant 60 : index
      %330 = memref.load %arg3[%c60] : memref<98xf32, #tpu.memory_space<smem>>
      %c0_136 = arith.constant 0 : index
      %c20 = arith.constant 20 : index
      %331 = vector.load %arg8[%c0_136, %c20] : memref<2x358xf32, #tpu.memory_space<vmem>>, vector<2x256xf32>
      %332 = vector.broadcast %329 : f32 to vector<2x256xf32>
      %333 = arith.mulf %332, %331 : vector<2x256xf32>
      %c0_137 = arith.constant 0 : index
      %c20_138 = arith.constant 20 : index
      %334 = vector.load %arg9[%c0_137, %c20_138] : memref<2x358xf32, #tpu.memory_space<vmem>>, vector<2x256xf32>
      %335 = vector.broadcast %330 : f32 to vector<2x256xf32>
      %336 = arith.mulf %335, %334 : vector<2x256xf32>
      %337 = arith.addf %333, %336 : vector<2x256xf32>
      %338 = arith.addf %328, %337 : vector<2x256xf32>
      %c18_139 = arith.constant 18 : index
      %339 = memref.load %arg3[%c18_139] : memref<98xf32, #tpu.memory_space<smem>>
      %c67_140 = arith.constant 67 : index
      %340 = memref.load %arg3[%c67_140] : memref<98xf32, #tpu.memory_space<smem>>
      %c0_141 = arith.constant 0 : index
      %c36_142 = arith.constant 36 : index
      %341 = vector.load %arg8[%c0_141, %c36_142] : memref<2x358xf32, #tpu.memory_space<vmem>>, vector<2x256xf32>
      %342 = vector.broadcast %339 : f32 to vector<2x256xf32>
      %343 = arith.mulf %342, %341 : vector<2x256xf32>
      %c0_143 = arith.constant 0 : index
      %c36_144 = arith.constant 36 : index
      %344 = vector.load %arg9[%c0_143, %c36_144] : memref<2x358xf32, #tpu.memory_space<vmem>>, vector<2x256xf32>
      %345 = vector.broadcast %340 : f32 to vector<2x256xf32>
      %346 = arith.mulf %345, %344 : vector<2x256xf32>
      %347 = arith.addf %343, %346 : vector<2x256xf32>
      %348 = arith.addf %338, %347 : vector<2x256xf32>
      %c25 = arith.constant 25 : index
      %349 = memref.load %arg3[%c25] : memref<98xf32, #tpu.memory_space<smem>>
      %c74 = arith.constant 74 : index
      %350 = memref.load %arg3[%c74] : memref<98xf32, #tpu.memory_space<smem>>
      %c0_145 = arith.constant 0 : index
      %c52_146 = arith.constant 52 : index
      %351 = vector.load %arg8[%c0_145, %c52_146] : memref<2x358xf32, #tpu.memory_space<vmem>>, vector<2x256xf32>
      %352 = vector.broadcast %349 : f32 to vector<2x256xf32>
      %353 = arith.mulf %352, %351 : vector<2x256xf32>
      %c0_147 = arith.constant 0 : index
      %c52_148 = arith.constant 52 : index
      %354 = vector.load %arg9[%c0_147, %c52_148] : memref<2x358xf32, #tpu.memory_space<vmem>>, vector<2x256xf32>
      %355 = vector.broadcast %350 : f32 to vector<2x256xf32>
      %356 = arith.mulf %355, %354 : vector<2x256xf32>
      %357 = arith.addf %353, %356 : vector<2x256xf32>
      %358 = arith.addf %348, %357 : vector<2x256xf32>
      %c32_149 = arith.constant 32 : index
      %359 = memref.load %arg3[%c32_149] : memref<98xf32, #tpu.memory_space<smem>>
      %c81_150 = arith.constant 81 : index
      %360 = memref.load %arg3[%c81_150] : memref<98xf32, #tpu.memory_space<smem>>
      %c0_151 = arith.constant 0 : index
      %c68 = arith.constant 68 : index
      %361 = vector.load %arg8[%c0_151, %c68] : memref<2x358xf32, #tpu.memory_space<vmem>>, vector<2x256xf32>
      %362 = vector.broadcast %359 : f32 to vector<2x256xf32>
      %363 = arith.mulf %362, %361 : vector<2x256xf32>
      %c0_152 = arith.constant 0 : index
      %c68_153 = arith.constant 68 : index
      %364 = vector.load %arg9[%c0_152, %c68_153] : memref<2x358xf32, #tpu.memory_space<vmem>>, vector<2x256xf32>
      %365 = vector.broadcast %360 : f32 to vector<2x256xf32>
      %366 = arith.mulf %365, %364 : vector<2x256xf32>
      %367 = arith.addf %363, %366 : vector<2x256xf32>
      %368 = arith.addf %358, %367 : vector<2x256xf32>
      %c39 = arith.constant 39 : index
      %369 = memref.load %arg3[%c39] : memref<98xf32, #tpu.memory_space<smem>>
      %c88 = arith.constant 88 : index
      %370 = memref.load %arg3[%c88] : memref<98xf32, #tpu.memory_space<smem>>
      %c0_154 = arith.constant 0 : index
      %c84_155 = arith.constant 84 : index
      %371 = vector.load %arg8[%c0_154, %c84_155] : memref<2x358xf32, #tpu.memory_space<vmem>>, vector<2x256xf32>
      %372 = vector.broadcast %369 : f32 to vector<2x256xf32>
      %373 = arith.mulf %372, %371 : vector<2x256xf32>
      %c0_156 = arith.constant 0 : index
      %c84_157 = arith.constant 84 : index
      %374 = vector.load %arg9[%c0_156, %c84_157] : memref<2x358xf32, #tpu.memory_space<vmem>>, vector<2x256xf32>
      %375 = vector.broadcast %370 : f32 to vector<2x256xf32>
      %376 = arith.mulf %375, %374 : vector<2x256xf32>
      %377 = arith.addf %373, %376 : vector<2x256xf32>
      %378 = arith.addf %368, %377 : vector<2x256xf32>
      %c46 = arith.constant 46 : index
      %379 = memref.load %arg3[%c46] : memref<98xf32, #tpu.memory_space<smem>>
      %c95 = arith.constant 95 : index
      %380 = memref.load %arg3[%c95] : memref<98xf32, #tpu.memory_space<smem>>
      %c0_158 = arith.constant 0 : index
      %c100 = arith.constant 100 : index
      %381 = vector.load %arg8[%c0_158, %c100] : memref<2x358xf32, #tpu.memory_space<vmem>>, vector<2x256xf32>
      %382 = vector.broadcast %379 : f32 to vector<2x256xf32>
      %383 = arith.mulf %382, %381 : vector<2x256xf32>
      %c0_159 = arith.constant 0 : index
      %c100_160 = arith.constant 100 : index
      %384 = vector.load %arg9[%c0_159, %c100_160] : memref<2x358xf32, #tpu.memory_space<vmem>>, vector<2x256xf32>
      %385 = vector.broadcast %380 : f32 to vector<2x256xf32>
      %386 = arith.mulf %385, %384 : vector<2x256xf32>
      %387 = arith.addf %383, %386 : vector<2x256xf32>
      %388 = arith.addf %378, %387 : vector<2x256xf32>
      %c4_161 = arith.constant 4 : index
      %c0_162 = arith.constant 0 : index
      %389 = vector.load %arg4[%c4_161, %c0_162] : memref<7x256xf32, #tpu.memory_space<vmem>>, vector<1x256xf32>
      %390 = vector.broadcast %389 : vector<1x256xf32> to vector<2x256xf32>
      %391 = arith.mulf %390, %388 : vector<2x256xf32>
      %392 = arith.addf %317, %391 : vector<2x256xf32>
      %cst_163 = arith.constant 0.000000e+00 : f32
      %393 = vector.broadcast %cst_163 : f32 to vector<2x256xf32>
      %c5 = arith.constant 5 : index
      %394 = memref.load %arg3[%c5] : memref<98xf32, #tpu.memory_space<smem>>
      %c54 = arith.constant 54 : index
      %395 = memref.load %arg3[%c54] : memref<98xf32, #tpu.memory_space<smem>>
      %c0_164 = arith.constant 0 : index
      %c5_165 = arith.constant 5 : index
      %396 = vector.load %arg8[%c0_164, %c5_165] : memref<2x358xf32, #tpu.memory_space<vmem>>, vector<2x256xf32>
      %397 = vector.broadcast %394 : f32 to vector<2x256xf32>
      %398 = arith.mulf %397, %396 : vector<2x256xf32>
      %c0_166 = arith.constant 0 : index
      %c5_167 = arith.constant 5 : index
      %399 = vector.load %arg9[%c0_166, %c5_167] : memref<2x358xf32, #tpu.memory_space<vmem>>, vector<2x256xf32>
      %400 = vector.broadcast %395 : f32 to vector<2x256xf32>
      %401 = arith.mulf %400, %399 : vector<2x256xf32>
      %402 = arith.addf %398, %401 : vector<2x256xf32>
      %403 = arith.addf %393, %402 : vector<2x256xf32>
      %c12 = arith.constant 12 : index
      %404 = memref.load %arg3[%c12] : memref<98xf32, #tpu.memory_space<smem>>
      %c61 = arith.constant 61 : index
      %405 = memref.load %arg3[%c61] : memref<98xf32, #tpu.memory_space<smem>>
      %c0_168 = arith.constant 0 : index
      %c21_169 = arith.constant 21 : index
      %406 = vector.load %arg8[%c0_168, %c21_169] : memref<2x358xf32, #tpu.memory_space<vmem>>, vector<2x256xf32>
      %407 = vector.broadcast %404 : f32 to vector<2x256xf32>
      %408 = arith.mulf %407, %406 : vector<2x256xf32>
      %c0_170 = arith.constant 0 : index
      %c21_171 = arith.constant 21 : index
      %409 = vector.load %arg9[%c0_170, %c21_171] : memref<2x358xf32, #tpu.memory_space<vmem>>, vector<2x256xf32>
      %410 = vector.broadcast %405 : f32 to vector<2x256xf32>
      %411 = arith.mulf %410, %409 : vector<2x256xf32>
      %412 = arith.addf %408, %411 : vector<2x256xf32>
      %413 = arith.addf %403, %412 : vector<2x256xf32>
      %c19_172 = arith.constant 19 : index
      %414 = memref.load %arg3[%c19_172] : memref<98xf32, #tpu.memory_space<smem>>
      %c68_173 = arith.constant 68 : index
      %415 = memref.load %arg3[%c68_173] : memref<98xf32, #tpu.memory_space<smem>>
      %c0_174 = arith.constant 0 : index
      %c37_175 = arith.constant 37 : index
      %416 = vector.load %arg8[%c0_174, %c37_175] : memref<2x358xf32, #tpu.memory_space<vmem>>, vector<2x256xf32>
      %417 = vector.broadcast %414 : f32 to vector<2x256xf32>
      %418 = arith.mulf %417, %416 : vector<2x256xf32>
      %c0_176 = arith.constant 0 : index
      %c37_177 = arith.constant 37 : index
      %419 = vector.load %arg9[%c0_176, %c37_177] : memref<2x358xf32, #tpu.memory_space<vmem>>, vector<2x256xf32>
      %420 = vector.broadcast %415 : f32 to vector<2x256xf32>
      %421 = arith.mulf %420, %419 : vector<2x256xf32>
      %422 = arith.addf %418, %421 : vector<2x256xf32>
      %423 = arith.addf %413, %422 : vector<2x256xf32>
      %c26 = arith.constant 26 : index
      %424 = memref.load %arg3[%c26] : memref<98xf32, #tpu.memory_space<smem>>
      %c75 = arith.constant 75 : index
      %425 = memref.load %arg3[%c75] : memref<98xf32, #tpu.memory_space<smem>>
      %c0_178 = arith.constant 0 : index
      %c53_179 = arith.constant 53 : index
      %426 = vector.load %arg8[%c0_178, %c53_179] : memref<2x358xf32, #tpu.memory_space<vmem>>, vector<2x256xf32>
      %427 = vector.broadcast %424 : f32 to vector<2x256xf32>
      %428 = arith.mulf %427, %426 : vector<2x256xf32>
      %c0_180 = arith.constant 0 : index
      %c53_181 = arith.constant 53 : index
      %429 = vector.load %arg9[%c0_180, %c53_181] : memref<2x358xf32, #tpu.memory_space<vmem>>, vector<2x256xf32>
      %430 = vector.broadcast %425 : f32 to vector<2x256xf32>
      %431 = arith.mulf %430, %429 : vector<2x256xf32>
      %432 = arith.addf %428, %431 : vector<2x256xf32>
      %433 = arith.addf %423, %432 : vector<2x256xf32>
      %c33_182 = arith.constant 33 : index
      %434 = memref.load %arg3[%c33_182] : memref<98xf32, #tpu.memory_space<smem>>
      %c82_183 = arith.constant 82 : index
      %435 = memref.load %arg3[%c82_183] : memref<98xf32, #tpu.memory_space<smem>>
      %c0_184 = arith.constant 0 : index
      %c69 = arith.constant 69 : index
      %436 = vector.load %arg8[%c0_184, %c69] : memref<2x358xf32, #tpu.memory_space<vmem>>, vector<2x256xf32>
      %437 = vector.broadcast %434 : f32 to vector<2x256xf32>
      %438 = arith.mulf %437, %436 : vector<2x256xf32>
      %c0_185 = arith.constant 0 : index
      %c69_186 = arith.constant 69 : index
      %439 = vector.load %arg9[%c0_185, %c69_186] : memref<2x358xf32, #tpu.memory_space<vmem>>, vector<2x256xf32>
      %440 = vector.broadcast %435 : f32 to vector<2x256xf32>
      %441 = arith.mulf %440, %439 : vector<2x256xf32>
      %442 = arith.addf %438, %441 : vector<2x256xf32>
      %443 = arith.addf %433, %442 : vector<2x256xf32>
      %c40 = arith.constant 40 : index
      %444 = memref.load %arg3[%c40] : memref<98xf32, #tpu.memory_space<smem>>
      %c89 = arith.constant 89 : index
      %445 = memref.load %arg3[%c89] : memref<98xf32, #tpu.memory_space<smem>>
      %c0_187 = arith.constant 0 : index
      %c85_188 = arith.constant 85 : index
      %446 = vector.load %arg8[%c0_187, %c85_188] : memref<2x358xf32, #tpu.memory_space<vmem>>, vector<2x256xf32>
      %447 = vector.broadcast %444 : f32 to vector<2x256xf32>
      %448 = arith.mulf %447, %446 : vector<2x256xf32>
      %c0_189 = arith.constant 0 : index
      %c85_190 = arith.constant 85 : index
      %449 = vector.load %arg9[%c0_189, %c85_190] : memref<2x358xf32, #tpu.memory_space<vmem>>, vector<2x256xf32>
      %450 = vector.broadcast %445 : f32 to vector<2x256xf32>
      %451 = arith.mulf %450, %449 : vector<2x256xf32>
      %452 = arith.addf %448, %451 : vector<2x256xf32>
      %453 = arith.addf %443, %452 : vector<2x256xf32>
      %c47 = arith.constant 47 : index
      %454 = memref.load %arg3[%c47] : memref<98xf32, #tpu.memory_space<smem>>
      %c96_191 = arith.constant 96 : index
      %455 = memref.load %arg3[%c96_191] : memref<98xf32, #tpu.memory_space<smem>>
      %c0_192 = arith.constant 0 : index
      %c101 = arith.constant 101 : index
      %456 = vector.load %arg8[%c0_192, %c101] : memref<2x358xf32, #tpu.memory_space<vmem>>, vector<2x256xf32>
      %457 = vector.broadcast %454 : f32 to vector<2x256xf32>
      %458 = arith.mulf %457, %456 : vector<2x256xf32>
      %c0_193 = arith.constant 0 : index
      %c101_194 = arith.constant 101 : index
      %459 = vector.load %arg9[%c0_193, %c101_194] : memref<2x358xf32, #tpu.memory_space<vmem>>, vector<2x256xf32>
      %460 = vector.broadcast %455 : f32 to vector<2x256xf32>
      %461 = arith.mulf %460, %459 : vector<2x256xf32>
      %462 = arith.addf %458, %461 : vector<2x256xf32>
      %463 = arith.addf %453, %462 : vector<2x256xf32>
      %c5_195 = arith.constant 5 : index
      %c0_196 = arith.constant 0 : index
      %464 = vector.load %arg4[%c5_195, %c0_196] : memref<7x256xf32, #tpu.memory_space<vmem>>, vector<1x256xf32>
      %465 = vector.broadcast %464 : vector<1x256xf32> to vector<2x256xf32>
      %466 = arith.mulf %465, %463 : vector<2x256xf32>
      %467 = arith.addf %392, %466 : vector<2x256xf32>
      %cst_197 = arith.constant 0.000000e+00 : f32
      %468 = vector.broadcast %cst_197 : f32 to vector<2x256xf32>
      %c6 = arith.constant 6 : index
      %469 = memref.load %arg3[%c6] : memref<98xf32, #tpu.memory_space<smem>>
      %c55 = arith.constant 55 : index
      %470 = memref.load %arg3[%c55] : memref<98xf32, #tpu.memory_space<smem>>
      %c0_198 = arith.constant 0 : index
      %c6_199 = arith.constant 6 : index
      %471 = vector.load %arg8[%c0_198, %c6_199] : memref<2x358xf32, #tpu.memory_space<vmem>>, vector<2x256xf32>
      %472 = vector.broadcast %469 : f32 to vector<2x256xf32>
      %473 = arith.mulf %472, %471 : vector<2x256xf32>
      %c0_200 = arith.constant 0 : index
      %c6_201 = arith.constant 6 : index
      %474 = vector.load %arg9[%c0_200, %c6_201] : memref<2x358xf32, #tpu.memory_space<vmem>>, vector<2x256xf32>
      %475 = vector.broadcast %470 : f32 to vector<2x256xf32>
      %476 = arith.mulf %475, %474 : vector<2x256xf32>
      %477 = arith.addf %473, %476 : vector<2x256xf32>
      %478 = arith.addf %468, %477 : vector<2x256xf32>
      %c13 = arith.constant 13 : index
      %479 = memref.load %arg3[%c13] : memref<98xf32, #tpu.memory_space<smem>>
      %c62 = arith.constant 62 : index
      %480 = memref.load %arg3[%c62] : memref<98xf32, #tpu.memory_space<smem>>
      %c0_202 = arith.constant 0 : index
      %c22_203 = arith.constant 22 : index
      %481 = vector.load %arg8[%c0_202, %c22_203] : memref<2x358xf32, #tpu.memory_space<vmem>>, vector<2x256xf32>
      %482 = vector.broadcast %479 : f32 to vector<2x256xf32>
      %483 = arith.mulf %482, %481 : vector<2x256xf32>
      %c0_204 = arith.constant 0 : index
      %c22_205 = arith.constant 22 : index
      %484 = vector.load %arg9[%c0_204, %c22_205] : memref<2x358xf32, #tpu.memory_space<vmem>>, vector<2x256xf32>
      %485 = vector.broadcast %480 : f32 to vector<2x256xf32>
      %486 = arith.mulf %485, %484 : vector<2x256xf32>
      %487 = arith.addf %483, %486 : vector<2x256xf32>
      %488 = arith.addf %478, %487 : vector<2x256xf32>
      %c20_206 = arith.constant 20 : index
      %489 = memref.load %arg3[%c20_206] : memref<98xf32, #tpu.memory_space<smem>>
      %c69_207 = arith.constant 69 : index
      %490 = memref.load %arg3[%c69_207] : memref<98xf32, #tpu.memory_space<smem>>
      %c0_208 = arith.constant 0 : index
      %c38_209 = arith.constant 38 : index
      %491 = vector.load %arg8[%c0_208, %c38_209] : memref<2x358xf32, #tpu.memory_space<vmem>>, vector<2x256xf32>
      %492 = vector.broadcast %489 : f32 to vector<2x256xf32>
      %493 = arith.mulf %492, %491 : vector<2x256xf32>
      %c0_210 = arith.constant 0 : index
      %c38_211 = arith.constant 38 : index
      %494 = vector.load %arg9[%c0_210, %c38_211] : memref<2x358xf32, #tpu.memory_space<vmem>>, vector<2x256xf32>
      %495 = vector.broadcast %490 : f32 to vector<2x256xf32>
      %496 = arith.mulf %495, %494 : vector<2x256xf32>
      %497 = arith.addf %493, %496 : vector<2x256xf32>
      %498 = arith.addf %488, %497 : vector<2x256xf32>
      %c27 = arith.constant 27 : index
      %499 = memref.load %arg3[%c27] : memref<98xf32, #tpu.memory_space<smem>>
      %c76 = arith.constant 76 : index
      %500 = memref.load %arg3[%c76] : memref<98xf32, #tpu.memory_space<smem>>
      %c0_212 = arith.constant 0 : index
      %c54_213 = arith.constant 54 : index
      %501 = vector.load %arg8[%c0_212, %c54_213] : memref<2x358xf32, #tpu.memory_space<vmem>>, vector<2x256xf32>
      %502 = vector.broadcast %499 : f32 to vector<2x256xf32>
      %503 = arith.mulf %502, %501 : vector<2x256xf32>
      %c0_214 = arith.constant 0 : index
      %c54_215 = arith.constant 54 : index
      %504 = vector.load %arg9[%c0_214, %c54_215] : memref<2x358xf32, #tpu.memory_space<vmem>>, vector<2x256xf32>
      %505 = vector.broadcast %500 : f32 to vector<2x256xf32>
      %506 = arith.mulf %505, %504 : vector<2x256xf32>
      %507 = arith.addf %503, %506 : vector<2x256xf32>
      %508 = arith.addf %498, %507 : vector<2x256xf32>
      %c34_216 = arith.constant 34 : index
      %509 = memref.load %arg3[%c34_216] : memref<98xf32, #tpu.memory_space<smem>>
      %c83_217 = arith.constant 83 : index
      %510 = memref.load %arg3[%c83_217] : memref<98xf32, #tpu.memory_space<smem>>
      %c0_218 = arith.constant 0 : index
      %c70_219 = arith.constant 70 : index
      %511 = vector.load %arg8[%c0_218, %c70_219] : memref<2x358xf32, #tpu.memory_space<vmem>>, vector<2x256xf32>
      %512 = vector.broadcast %509 : f32 to vector<2x256xf32>
      %513 = arith.mulf %512, %511 : vector<2x256xf32>
      %c0_220 = arith.constant 0 : index
      %c70_221 = arith.constant 70 : index
      %514 = vector.load %arg9[%c0_220, %c70_221] : memref<2x358xf32, #tpu.memory_space<vmem>>, vector<2x256xf32>
      %515 = vector.broadcast %510 : f32 to vector<2x256xf32>
      %516 = arith.mulf %515, %514 : vector<2x256xf32>
      %517 = arith.addf %513, %516 : vector<2x256xf32>
      %518 = arith.addf %508, %517 : vector<2x256xf32>
      %c41 = arith.constant 41 : index
      %519 = memref.load %arg3[%c41] : memref<98xf32, #tpu.memory_space<smem>>
      %c90 = arith.constant 90 : index
      %520 = memref.load %arg3[%c90] : memref<98xf32, #tpu.memory_space<smem>>
      %c0_222 = arith.constant 0 : index
      %c86_223 = arith.constant 86 : index
      %521 = vector.load %arg8[%c0_222, %c86_223] : memref<2x358xf32, #tpu.memory_space<vmem>>, vector<2x256xf32>
      %522 = vector.broadcast %519 : f32 to vector<2x256xf32>
      %523 = arith.mulf %522, %521 : vector<2x256xf32>
      %c0_224 = arith.constant 0 : index
      %c86_225 = arith.constant 86 : index
      %524 = vector.load %arg9[%c0_224, %c86_225] : memref<2x358xf32, #tpu.memory_space<vmem>>, vector<2x256xf32>
      %525 = vector.broadcast %520 : f32 to vector<2x256xf32>
      %526 = arith.mulf %525, %524 : vector<2x256xf32>
      %527 = arith.addf %523, %526 : vector<2x256xf32>
      %528 = arith.addf %518, %527 : vector<2x256xf32>
      %c48_226 = arith.constant 48 : index
      %529 = memref.load %arg3[%c48_226] : memref<98xf32, #tpu.memory_space<smem>>
      %c97_227 = arith.constant 97 : index
      %530 = memref.load %arg3[%c97_227] : memref<98xf32, #tpu.memory_space<smem>>
      %c0_228 = arith.constant 0 : index
      %c102 = arith.constant 102 : index
      %531 = vector.load %arg8[%c0_228, %c102] : memref<2x358xf32, #tpu.memory_space<vmem>>, vector<2x256xf32>
      %532 = vector.broadcast %529 : f32 to vector<2x256xf32>
      %533 = arith.mulf %532, %531 : vector<2x256xf32>
      %c0_229 = arith.constant 0 : index
      %c102_230 = arith.constant 102 : index
      %534 = vector.load %arg9[%c0_229, %c102_230] : memref<2x358xf32, #tpu.memory_space<vmem>>, vector<2x256xf32>
      %535 = vector.broadcast %530 : f32 to vector<2x256xf32>
      %536 = arith.mulf %535, %534 : vector<2x256xf32>
      %537 = arith.addf %533, %536 : vector<2x256xf32>
      %538 = arith.addf %528, %537 : vector<2x256xf32>
      %c6_231 = arith.constant 6 : index
      %c0_232 = arith.constant 0 : index
      %539 = vector.load %arg4[%c6_231, %c0_232] : memref<7x256xf32, #tpu.memory_space<vmem>>, vector<1x256xf32>
      %540 = vector.broadcast %539 : vector<1x256xf32> to vector<2x256xf32>
      %541 = arith.mulf %540, %538 : vector<2x256xf32>
      %542 = arith.addf %467, %541 : vector<2x256xf32>
      %543 = arith.negf %542 : vector<2x256xf32>
      %544 = math.exp %543 : vector<2x256xf32>
      %cst_233 = arith.constant 1.000000e+00 : f32
      %545 = vector.broadcast %cst_233 : f32 to vector<2x256xf32>
      %546 = arith.addf %545, %544 : vector<2x256xf32>
      %547 = arith.divf %545, %546 : vector<2x256xf32>
      %c0_234 = arith.constant 0 : index
      %c0_235 = arith.constant 0 : index
      %c0_236 = arith.constant 0 : index
      %548 = vector.load %arg5[%c0_234, %c0_235, %c0_236] : memref<2x1x256xf32, #tpu.memory_space<vmem>>, vector<2x1x256xf32>
      %549 = vector.shape_cast %548 : vector<2x1x256xf32> to vector<2x256xf32>
      %550 = vector.shape_cast %547 : vector<2x256xf32> to vector<2x1x256xf32>
      tpu.vector_store %arg5[%c0_234, %c0_235, %c0_236], %550 {strides = array<i32>} : memref<2x1x256xf32, #tpu.memory_space<vmem>>, vector<2x1x256xf32>,
    } else {
    }
    return
  }
  func.func @transform_0(%arg0: i32, %arg1: i32) -> (i32, i32, i32) {
    %c0_i32 = arith.constant 0 : i32
    %c0_i32_0 = arith.constant 0 : i32
    return %arg0, %arg1, %c0_i32 : i32, i32, i32
  }
  func.func @transform_1(%arg0: i32, %arg1: i32) -> i32 {
    %c0_i32 = arith.constant 0 : i32
    %c0_i32_0 = arith.constant 0 : i32
    return %c0_i32 : i32
  }
  func.func @transform_2(%arg0: i32, %arg1: i32) -> (i32, i32) {
    %c0_i32 = arith.constant 0 : i32
    %c0_i32_0 = arith.constant 0 : i32
    %c0_i32_1 = arith.constant 0 : i32
    return %c0_i32, %c0_i32_0 : i32, i32
  }
  func.func @transform_3(%arg0: i32, %arg1: i32) -> (i32, i32, i32) {
    %c0_i32 = arith.constant 0 : i32
    %c0_i32_0 = arith.constant 0 : i32
    %c0_i32_1 = arith.constant 0 : i32
    return %arg0, %c0_i32, %c0_i32_0 : i32, i32, i32
  }
}

</mosaic_0001>

<bundles_post_ra>
// kernel: tpu_custom_call.1
= control target key start
LH: loop header
LB: loop body
LE: loop exit
PB: predicated region body
PF: predicated region fallthrough
CT: control target
= control target key end

     0   :  { %8 = vsyncpa [#allocation7], 0  ;;  %s1956_s0 = inlined_call_operand.hbm [shape: f32[2,4,256], index: 0, kind: input, shape index: {}]   ;;  %s1957_s1 = inlined_call_operand.hbm [shape: f32[98], index: 1, kind: input, shape index: {}]   ;;  %s1958_s2 = inlined_call_operand.hbm [shape: f32[7,256], index: 2, kind: input, shape index: {}]   ;;  %s1959_s3 = inlined_call_operand.hbm [shape: f32[2,1,256], index: 3, kind: output, shape index: {}]  }
   0x1   :  { %9 = vsyncpa [#allocation9], 0 }
   0x2   :  { %10 = vsyncpa [#allocation12], 0 }
   0x3   :  { %11 = vsyncpa [#allocation8], 0  ;;  %s16_s14 = sshll.u32 %s1956_s0, 4  ;;  %s1405_s15 = smov [#allocation6]   ;;  %s17_s14 = int_to_ptr.hbm [resolvable:$true] %s16_s14 }
   0x4   :  { %s18_s16 = sshll.u32 %s1405_s15, 4  ;;  %s30_s19 = sshll.u32 %s1957_s1, 4  ;;  %s19_s16 = int_to_ptr.vmem [resolvable:$true] %s18_s16  ;;  %s31_s19 = int_to_ptr.hbm [resolvable:$true] %s30_s19 }
   0x5   :  { %s1406_s20 = smov 128   ;;  %s1407_s21 = smov 8  }
   0x6   :  { %24 = dma.hbm_to_vmem [thread:$0]  %s17_s14, 256, %s19_s16, [#allocation7], %s1406_s20, %s1406_s20, %s1407_s21  }
   0x7   :  { %s1408_s22 = smov [#allocation10]   ;;  %s39_s25 = sshll.u32 %s1958_s2, 4  ;;  %s40_s25 = int_to_ptr.hbm [resolvable:$true] %s39_s25 }
   0x8   :  { %33 = dma.hbm_to_smem %s31_s19, 16, %s1408_s22, [#allocation9]  }
   0x9   :  { %s1409_s0 = smov [#allocation11]  }
   0xa   :  { %s41_s26 = sshll.u32 %s1409_s0, 4  ;;  %s42_s26 = int_to_ptr.vmem [resolvable:$true] %s41_s26 }
   0xb   :  { %44 = dma.hbm_to_vmem [thread:$0]  %s40_s25, 256, %s42_s26, [#allocation12]  }
   0xc   :  { %1397 = dma.done.wait [#allocation7], 256  }
   0xd   :  { %1398 = vsyncadd [#allocation7], 4294967040 }
   0xe   :  { %1399 = dma.done.wait [#allocation9], 16  }
   0xf   :  { %1400 = vsyncadd [#allocation9], 4294967280 }
  0x10   :  { %1401 = dma.done.wait [#allocation12], 256  }
  0x11   :  { %1402 = vsyncadd [#allocation12], 4294967040 }
  0x12   :  { %57 = sfence }
  0x13   :  { %v58_v0 = vld [vmem:[#allocation6] sm:$0xff]  ;;  %v59_v1 = vld [vmem:[#allocation6 + $0x8] sm:$0xff]  ;;  %vm73_vm0 = vcmask 1043456   ;;  %vm151_vm1 = vcmask 1041408   ;;  %vm159_vm2 = vcmask 1041409   ;;  %vm186_vm3 = vcmask 1043458  }
  0x14   :  { %62 = vst [vmem:[#allocation1] ss:$2 sm:$0xff] %v58_v0  ;;  %vm188_vm4 = vcmask 832516   ;;  %vm187_vm5 = vmor %vm186_vm3, %vm151_vm1  ;;  %vm161_vm6 = vcmask 1043459   ;;  %v1410_v58 = vmov 0.0   ;;  %vm163_vm8 = vcmask 1045509  }
  0x15   :  { %66 = vst [vmem:[#allocation1 + $0x10] ss:$2 sm:$0xff] %v59_v1  ;;  %vm189_vm7 = vmor %vm188_vm4, %vm187_vm5  ;;  %vm165_vm9 = vcmask 1047559   ;;  %s1411_s1 = smov 51   ;;  %vm252_vm10 = vcmask 1041816   ;;  %vm255_vm12 = vcmask 414724  }
  0x16   :  { %190 = vst.msk [vmem:[#allocation4] sm:$0x3f] %vm189_vm7, %v1410_v58  ;;  %vm254_vm11 = vmor %vm186_vm3, %vm252_vm10  ;;  %vm249_vm13 = vcmask 416768   ;;  %s1194_s2 = sld [smem:[#allocation10 + $0x23]]  ;;  %s1412_s22 = smov 48   ;;  %vm289_vm15 = vcmask 916480  }
  0x17   :  { %191 = vst.msk [vmem:[#allocation5] sm:$0x3f] %vm189_vm7, %v1410_v58  ;;  %vm1478_vm14 = vmor %vm255_vm12, %vm254_vm11  ;;  %s1190_s27 = sld [smem:[#allocation10 + $0x15]]  ;;  %s1413_s23 = smov 80   ;;  %vm334_vm3 = vcmask 523264   ;;  %vm349_vm4 = vcmask 392192  }
  0x18   :  { %s1485_s28 = sld [smem:[#allocation10 + $0x7]]  ;;  %s1414_s25 = smov 112   ;;  %vm364_vm5 = vcmask 261120   ;;  %vm617_vm7 = vcmask 1031168   ;;  %vm980_vm10 = vcmask 1006592   ;;  %vm1101_vm11 = vcmask 998400  }
  0x19   :  { %s1487_s29 = sld [smem:[#allocation10 + $0xf]] }
  0x1a   :  { %s1489_s30 = sld [smem:[#allocation10 + $0x1c]] }
  0x1b   :  { %v63_v2 = vld.sshfl [vmem:[#allocation1] sm:$0xff pattern:$0x75316420]  ;;  %v64_v3 = vld.sshfl [vmem:[#allocation1 + $0x8] sm:$0xff pattern:$0x75316420] }
  0x1c   :  { %v67_v4 = vld.sshfl [vmem:[#allocation1 + $0x10] sm:$0xff pattern:$0x75316420]  ;;  %v68_v5 = vld.sshfl [vmem:[#allocation1 + $0x18] sm:$0xff pattern:$0x75316420] }
  0x1d   :  { %v74_v6 = vsel %vm73_vm0, %v63_v2, 0.0  ;;  %v81_v7 = vsel %vm73_vm0, %v64_v3, 0.0  ;;  %v88_v8 = vsel %vm73_vm0, %v67_v4, 0.0  ;;  %v95_v9 = vsel %vm73_vm0, %v68_v5, 0.0  ;;  %102 = vst [vmem:[#allocation1] ss:$2 sm:$0xff] %v58_v0 }
  0x1e   :  { %v75_v10 = vrot.slane %v74_v6, 4  ;;  %v82_v11 = vrot.slane %v81_v7, 4  ;;  %v89_v12 = vrot.slane %v88_v8, 4  ;;  %v96_v13 = vrot.slane %v95_v9, 4  ;;  %106 = vst [vmem:[#allocation1 + $0x10] ss:$2 sm:$0xff] %v59_v1 }
  0x1f   :  { %s1491_s4 = sld [smem:[#allocation10 + $0xe]] }
  0x20   :  { %v76_v14 = vadd.f32 %v75_v10, %v74_v6  ;;  %v83_v15 = vadd.f32 %v82_v11, %v81_v7  ;;  %v90_v16 = vadd.f32 %v89_v12, %v88_v8  ;;  %v97_v17 = vadd.f32 %v96_v13, %v95_v9  ;;  %s1195_s5 = sld [smem:[#allocation10 + $0x54]] }
  0x21   :  { %s1191_s6 = sld [smem:[#allocation10 + $0x46]] }
  0x22   :  { %v77_v18 = vrot.slane %v76_v14, 2  ;;  %v84_v19 = vrot.slane %v83_v15, 2  ;;  %v91_v20 = vrot.slane %v90_v16, 2  ;;  %v98_v21 = vrot.slane %v97_v17, 2  ;;  %s1187_s7 = sld [smem:[#allocation10 + $0x38]] }
  0x23   :  { %s1493_s8 = sld [smem:[#allocation10 + $0x24]] }
  0x24   :  { %v78_v22 = vadd.f32 %v77_v18, %v76_v14  ;;  %v85_v23 = vadd.f32 %v84_v19, %v83_v15  ;;  %v92_v24 = vadd.f32 %v91_v20, %v90_v16  ;;  %v99_v25 = vadd.f32 %v98_v21, %v97_v17  ;;  %v103_v26 = vld.sshfl [vmem:[#allocation1] sm:$0xff pattern:$0x75316420]  ;;  %v104_v27 = vld.sshfl [vmem:[#allocation1 + $0x8] sm:$0xff pattern:$0x75316420] }
  0x25   :  { %v107_v28 = vld.sshfl [vmem:[#allocation1 + $0x10] sm:$0xff pattern:$0x75316420]  ;;  %v108_v29 = vld.sshfl [vmem:[#allocation1 + $0x18] sm:$0xff pattern:$0x75316420] }
  0x26   :  { %v79_v30 = vrot.slane %v78_v22, 1  ;;  %v86_v31 = vrot.slane %v85_v23, 1  ;;  %v93_v32 = vrot.slane %v92_v24, 1  ;;  %v100_v33 = vrot.slane %v99_v25, 1  ;;  %s1496_s9 = sld [smem:[#allocation10 + $0x2a]] }
  0x27   :  { %v113_v34 = vsel %vm73_vm0, %v103_v26, -inf  ;;  %v120_v35 = vsel %vm73_vm0, %v104_v27, -inf  ;;  %v127_v36 = vsel %vm73_vm0, %v107_v28, -inf  ;;  %v134_v37 = vsel %vm73_vm0, %v108_v29, -inf  ;;  %s1500_s10 = sld [smem:[#allocation10 + $0x40]] }
  0x28   :  { %v80_v38 = vadd.f32 %v79_v30, %v78_v22  ;;  %v87_v39 = vadd.f32 %v86_v31, %v85_v23  ;;  %v94_v40 = vadd.f32 %v93_v32, %v92_v24  ;;  %v101_v41 = vadd.f32 %v100_v33, %v99_v25  ;;  %s1502_s11 = sld [smem:[#allocation10 + $0x4d]] }
  0x29   :  { %v114_v42 = vrot.slane %v113_v34, 4  ;;  %v121_v43 = vrot.slane %v120_v35, 4  ;;  %v128_v44 = vrot.slane %v127_v36, 4  ;;  %v135_v45 = vrot.slane %v134_v37, 4  ;;  %s1504_s12 = sld [smem:[#allocation10 + $0x3f]] }
  0x2a   :  { %v149_v46 = vrot.slane %v87_v39, 6  ;;  %v150_v47 = vrot.slane %v101_v41, 6  ;;  %s1506_s13 = sld [smem:[#allocation10 + $0x55]]  ;;  %v340_v31 = vstv %s1194_s2  ;;  %v310_v32 = vstv %s1190_s27 }
  0x2b   :  { %v115_v48 = vmax.f32 %v113_v34, %v114_v42  ;;  %v122_v49 = vmax.f32 %v120_v35, %v121_v43  ;;  %v129_v50 = vmax.f32 %v127_v36, %v128_v44  ;;  %v136_v51 = vmax.f32 %v134_v37, %v135_v45  ;;  %s1510_s14 = sld [smem:[#allocation10 + $0x5b]] }
  0x2c   :  { %v152_v52 = vsel %vm151_vm1, %v80_v38, %v149_v46  ;;  %v153_v53 = vsel %vm151_vm1, %v94_v40, %v150_v47  ;;  %v342_v33 = vstv %s1195_s5  ;;  %v312_v34 = vstv %s1191_s6  ;;  %s1513_s15 = sld [smem:[#allocation10 + $0x8]] }
  0x2d   :  { %v158_v54 = vrot.slane %v153_v53, 7  ;;  %v116_v55 = vrot.slane %v115_v48, 2  ;;  %v123_v56 = vrot.slane %v122_v49, 2  ;;  %v130_v57 = vrot.slane %v129_v50, 2  ;;  %s1515_s16 = sld [smem:[#allocation10 + $0x39]] }
  0x2e   :  { %v137_v59 = vrot.slane %v136_v51, 2  ;;  %v279_v35 = vstv %s1485_s28  ;;  %v282_v36 = vstv %s1187_s7  ;;  %s1519_s17 = sld [smem:[#allocation10 + $0x10]]  ;;  %v325_v53 = vstv %s1489_s30  ;;  %s1415_s30 = smov 96  }
  0x2f   :  { %v160_v60 = vsel %vm159_vm2, %v158_v54, %v152_v52  ;;  %v117_v61 = vmax.f32 %v115_v48, %v116_v55  ;;  %v124_v62 = vmax.f32 %v122_v49, %v123_v56  ;;  %v131_v63 = vmax.f32 %v129_v50, %v130_v57  ;;  %s1522_s18 = sld [smem:[#allocation10 + $0x41]] }
  0x30   :  { %v162_v0 = vsel %vm161_vm6, %v158_v54, %v160_v60  ;;  %v138_v1 = vmax.f32 %v136_v51, %v137_v59  ;;  %s1524_s19 = sld [smem:[#allocation10 + $0x1d]]  ;;  %v412_v48 = vstv %s1500_s10  ;;  %v327_v49 = vstv %s1502_s11 }
  0x31   :  { %v164_v2 = vsel %vm163_vm8, %v158_v54, %v162_v0  ;;  %v118_v3 = vrot.slane %v117_v61, 1  ;;  %v125_v4 = vrot.slane %v124_v62, 1  ;;  %v132_v5 = vrot.slane %v131_v63, 1  ;;  %s1526_s20 = sld [smem:[#allocation10 + $0x4e]] }
  0x32   :  { %v166_v6 = vsel %vm165_vm9, %v158_v54, %v164_v2  ;;  %v139_v7 = vrot.slane %v138_v1, 1  ;;  %s1532_s21 = sld [smem:[#allocation10 + $0x16]]  ;;  %v297_v50 = vstv %s1504_s12  ;;  %v410_v52 = vstv %s1487_s29 }
  0x33   :  { %168 = vst [vmem:[#allocation2] sm:$0xf] %v166_v6  ;;  %v126_v8 = vmax.f32 %v124_v62, %v125_v4  ;;  %v119_v9 = vmax.f32 %v117_v61, %v118_v3  ;;  %v133_v10 = vmax.f32 %v131_v63, %v132_v5  ;;  %s1537_s24 = sld [smem:[#allocation10 + $0x47]]  ;;  %v295_v56 = vstv %s1491_s4  ;;  %s1416_s4 = smov 64  }
  0x34   :  { %v140_v11 = vmax.f32 %v138_v1, %v139_v7  ;;  %s1544_s0 = sld [smem:[#allocation10 + $0x56]]  ;;  %v454_v0 = vstv %s1506_s13  ;;  %v357_v1 = vstv %s1510_s14  ;;  %v398_v2 = vstv %s1515_s16  ;;  %s1417_s13 = smov 32  }
  0x35   :  { %v173_v12 = vrot.slane %v126_v8, 6  ;;  %s1548_s26 = sld [smem:[#allocation10 + $0x5c]]  ;;  %v452_v3 = vstv %s1493_s8  ;;  %v355_v4 = vstv %s1496_s9  ;;  %v396_v7 = vstv %s1513_s15 }
  0x36   :  { %v174_v13 = vrot.slane %v140_v11, 6  ;;  %s1554_s2 = sld [smem:[#allocation10 + $0x32]]  ;;  %vm304_vm0 = vcmask 785408  }
  0x37   :  { %v175_v14 = vsel %vm151_vm1, %v119_v9, %v173_v12  ;;  %s1557_s27 = sld [smem:[#allocation10 + $0x2]]  ;;  %v531_v9 = vstv %s1519_s17 }
  0x38   :  { %v176_v15 = vsel %vm151_vm1, %v133_v10, %v174_v13  ;;  %s1559_s28 = sld [smem:[#allocation10 + $0x33]]  ;;  %v438_v10 = vstv %s1524_s19  ;;  %v424_v11 = vstv %s1532_s21  ;;  %vm319_vm1 = vcmask 654336  }
  0x39   :  { %v179_v16 = vrot.slane %v176_v15, 7  ;;  %s1563_s29 = sld [smem:[#allocation10 + $0x3]]  ;;  %v533_v15 = vstv %s1522_s18 }
  0x3a   :  { %v244_v17 = vld [vmem:[#allocation2] sm:$0xf]  ;;  %s1568_s5 = sld [smem:[#allocation10 + $0x34]] }
  0x3b   :  { %246 = vrot.lane.b32.xlu0 %v244_v17, %s1411_s1  ;;  %v180_v18 = vsel %vm159_vm2, %v179_v16, %v175_v14  ;;  %s1573_s6 = sld [smem:[#allocation10 + $0x4]] }
  0x3c   :  { %v181_v19 = vsel %vm161_vm6, %v179_v16, %v180_v18  ;;  %s1577_s7 = sld [smem:[#allocation10 + $0x35]]  ;;  %v390_v24 = vstv %s1554_s2  ;;  %vm496_vm6 = vcmask 1039360  }
  0x3d   :  { %v182_v20 = vsel %vm163_vm8, %v179_v16, %v181_v19  ;;  %s1583_s8 = sld [smem:[#allocation10 + $0x5]]  ;;  %v426_v19 = vstv %s1537_s24  ;;  %vm738_vm8 = vcmask 1022976  }
  0x3e   :  { %v183_v21 = vsel %vm165_vm9, %v179_v16, %v182_v20  ;;  %v440_v16 = vstv %s1526_s20  ;;  %s1591_s9 = sld [smem:[#allocation10 + $0x36]]  ;;  %v575_v20 = vstv %s1544_s0  ;;  %vm859_vm9 = vcmask 1014784  }
  0x3f   :  { %185 = vst [vmem:[#allocation3] sm:$0xf] %v183_v21  ;;  %s1599_s10 = sld [smem:[#allocation10 + $0x6]] }
  0x40   :  { %s1603_s11 = sld [smem:[#allocation10 + $0x37]] }
  0x41   :  { %s1606_s12 = sld [smem:[#allocation10 + $0x25]] }
  0x42   :  { %s1619_s14 = sld [smem:[#allocation10 + $0x3a]] }
  0x43   :  { %s1625_s15 = sld [smem:[#allocation10 + $0x2b]] }
  0x44   :  { %s1631_s16 = sld [smem:[#allocation10 + $0x9]] }
  0x45   :  { %s1657_s17 = sld [smem:[#allocation10 + $0x11]] }
  0x46   :  { %v258_v22 = vld [vmem:[#allocation3] sm:$0xf]  ;;  %s1663_s18 = sld [smem:[#allocation10 + $0x42]] }
  0x47   :  { %260 = vrot.lane.b32.xlu0 %v258_v22, %s1411_s1  ;;  %s1550_s1 = sld [smem:[#allocation10 + $0x1]] }
  0x48   :  { %s1668_s19 = sld [smem:[#allocation10 + $0x4f]] }
  0x49   :  { %s1677_s20 = sld [smem:[#allocation10 + $0x48]] }
  0x4a   :  { %s1684_s21 = sld [smem:[#allocation10 + $0x1e]] }
  0x4b   :  { %s1218_s24 = sld [smem:[#allocation10 + $0x17]] }
  0x4c   :  { %s1699_s0 = sld [smem:[#allocation10 + $0x57]] }
  0x4d   :  { %v387_v21 = vstv %s1550_s1  ;;  %s1703_s1 = sld [smem:[#allocation10 + $0x5d]] }
  0x4e   :  { %s1708_s2 = sld [smem:[#allocation10 + $0x3b]] }
  0xad   :  { %v247_v23 = vpop.permute.xlu0 %246 }
  0xae   :  { %v248_v25 = vrot.slane %v247_v23, 6 }
  0xb0   :  { %v250_v26 = vsel %vm249_vm13, %v248_v25, %v247_v23  ;;  %v508_v25 = vstv %s1557_s27  ;;  %s1713_s27 = sld [smem:[#allocation10 + $0x2c]] }
  0xb1   :  { %257 = vst.msk [vmem:[#allocation4] sm:$0x3f] %vm1478_vm14, %v250_v26 }
  0xb8   :  { %v1508_v30 = vld [vmem:[#allocation4] sm:$0x3f] }
  0xb9   :  { %v261_v27 = vpop.permute.xlu0 %260  ;;  %v341_v38 = vmul.f32 %v340_v31, %v1508_v30  ;;  %v311_v39 = vmul.f32 %v310_v32, %v1508_v30  ;;  %v280_v42 = vmul.f32 %v279_v35, %v1508_v30  ;;  %v1540_v51 = vld [vmem:[#allocation4] sm:$0x3f]  ;;  %v326_v59 = vmul.f32 %v325_v53, %v1508_v30 }
  0xba   :  { %v262_v28 = vrot.slane %v261_v27, 6  ;;  %v411_v58 = vmul.f32 %v410_v52, %v1540_v51  ;;  %v296_v60 = vmul.f32 %v295_v56, %v1508_v30  ;;  %v453_v12 = vmul.f32 %v452_v3, %v1540_v51  ;;  %v1594_v18 = vld [vmem:[#allocation4] sm:$0x3f] }
  0xbb   :  { %v356_v13 = vmul.f32 %v355_v4, %v1508_v30  ;;  %v397_v17 = vmul.f32 %v396_v7, %v1540_v51  ;;  %v511_v30 = vstv %s1559_s28  ;;  %v629_v31 = vstv %s1563_s29  ;;  %s1228_s28 = sld [smem:[#allocation10 + $0xa]] }
  0xbc   :  { %v263_v29 = vsel %vm249_vm13, %v262_v28, %v261_v27  ;;  %v1608_v28 = vld [vmem:[#allocation4] sm:$0x3f]  ;;  %v532_v32 = vmul.f32 %v531_v9, %v1594_v18  ;;  %v632_v35 = vstv %s1568_s5  ;;  %v750_v53 = vstv %s1573_s6  ;;  %s1721_s29 = sld [smem:[#allocation10 + $0x12]] }
  0xbd   :  { %265 = vst.msk [vmem:[#allocation5] sm:$0x3f] %vm1478_vm14, %v263_v29  ;;  %v995_v3 = vstv %s1603_s11  ;;  %s1723_s5 = sld [smem:[#allocation10 + $0x43]] }
  0xbe   :  { %s1727_s6 = sld [smem:[#allocation10 + $0x50]] }
  0xbf   :  { %s1747_s11 = sld [smem:[#allocation10 + $0x58]] }
  0xc4   :  { %v281_v37 = vld [vmem:[#allocation5] sm:$0x3f] }
  0xc5   :  { %v343_v40 = vmul.f32 %v342_v33, %v281_v37  ;;  %v313_v41 = vmul.f32 %v312_v34, %v281_v37  ;;  %v283_v43 = vmul.f32 %v282_v36, %v281_v37  ;;  %v1528_v47 = vld [vmem:[#allocation5] sm:$0x3f]  ;;  %v328_v55 = vmul.f32 %v327_v49, %v281_v37  ;;  %v1640_v49 = vld [vmem:[#allocation4] sm:$0x3f] }
  0xc6   :  { %v413_v54 = vmul.f32 %v412_v48, %v1528_v47  ;;  %v298_v57 = vmul.f32 %v297_v50, %v281_v37  ;;  %v455_v5 = vmul.f32 %v454_v0, %v1528_v47  ;;  %v358_v6 = vmul.f32 %v357_v1, %v281_v37  ;;  %v1587_v14 = vld [vmem:[#allocation5] sm:$0x3f] }
  0xc7   :  { %v344_v44 = vadd.f32 %v343_v40, %v341_v38  ;;  %v314_v45 = vadd.f32 %v313_v41, %v311_v39  ;;  %v284_v46 = vadd.f32 %v283_v43, %v280_v42  ;;  %v329_v62 = vadd.f32 %v328_v55, %v326_v59  ;;  %v1610_v29 = vld [vmem:[#allocation5] sm:$0x3f]  ;;  %v1627_v38 = vld [vmem:[#allocation4] sm:$0x3f] }
  0xc8   :  { %v414_v61 = vadd.f32 %v413_v54, %v411_v58  ;;  %v299_v63 = vadd.f32 %v298_v57, %v296_v60  ;;  %v399_v8 = vmul.f32 %v398_v2, %v1528_v47  ;;  %v456_v22 = vadd.f32 %v455_v5, %v453_v12  ;;  %v1633_v41 = vld [vmem:[#allocation5] sm:$0x3f]  ;;  %v1647_v54 = vld [vmem:[#allocation4] sm:$0x3f] }
  0xc9   :  { %346 = vrot.lane.b32.xlu0 %v344_v44, %s1412_s22  ;;  %316 = vrot.lane.b32.xlu2 %v314_v45, %s1413_s23  ;;  %v359_v23 = vadd.f32 %v358_v6, %v356_v13  ;;  %v534_v27 = vmul.f32 %v533_v15, %v1587_v14  ;;  %v439_v33 = vmul.f32 %v438_v10, %v1540_v51  ;;  %v468_v34 = vstv %s1548_s26  ;;  %v1642_v50 = vld [vmem:[#allocation5] sm:$0x3f]  ;;  %s1697_s26 = sld [smem:[#allocation10 + $0x26]] }
  0xca   :  { %286 = vrot.lane.b32.xlu1 %v284_v46, %s1414_s25  ;;  %v400_v26 = vadd.f32 %v399_v8, %v397_v17  ;;  %v441_v36 = vmul.f32 %v440_v16, %v1528_v47  ;;  %v425_v37 = vmul.f32 %v424_v11, %v1540_v51  ;;  %v388_v39 = vmul.f32 %v387_v21, %v1540_v51  ;;  %v1649_v55 = vld [vmem:[#allocation5] sm:$0x3f] }
  0xcb   :  { %v391_v40 = vmul.f32 %v390_v24, %v1528_v47  ;;  %v509_v42 = vmul.f32 %v508_v25, %v1594_v18  ;;  %v512_v43 = vmul.f32 %v511_v30, %v1587_v14  ;;  %v630_v44 = vmul.f32 %v629_v31, %v1608_v28 }
  0xcc   :  { %v633_v45 = vmul.f32 %v632_v35, %v1610_v29  ;;  %v535_v46 = vadd.f32 %v534_v27, %v532_v32  ;;  %v427_v48 = vmul.f32 %v426_v19, %v1528_v47  ;;  %v751_v58 = vmul.f32 %v750_v53, %v1627_v38 }
  0xcd   :  { %v1644_v52 = vadd.f32 %v391_v40, %v388_v39  ;;  %v1651_v56 = vadd.f32 %v512_v43, %v509_v42  ;;  %v753_v59 = vstv %s1577_s7  ;;  %v442_v0 = vadd.f32 %v441_v36, %v439_v33  ;;  %s1732_s7 = sld [smem:[#allocation10 + $0x49]] }
  0xce   :  { %v1653_v57 = vadd.f32 %v633_v45, %v630_v44  ;;  %v754_v60 = vmul.f32 %v753_v59, %v1633_v41  ;;  %v428_v4 = vadd.f32 %v427_v48, %v425_v37  ;;  %v996_v7 = vmul.f32 %v995_v3, %v1649_v55 }
  0xcf   :  { %v519_v8 = vstv %s1619_s14  ;;  %v573_v10 = vstv %s1606_s12  ;;  %v466_v11 = vstv %s1625_s15  ;;  %v576_v13 = vmul.f32 %v575_v20, %v1587_v14  ;;  %s1751_s12 = sld [smem:[#allocation10 + $0x5e]] }
  0xd0   :  { %v1670_v5 = vadd.f32 %v754_v60, %v751_v58  ;;  %v469_v15 = vmul.f32 %v468_v34, %v1528_v47  ;;  %v517_v16 = vstv %s1631_s16  ;;  %v520_v17 = vmul.f32 %v519_v8, %v1587_v14  ;;  %s1756_s14 = sld [smem:[#allocation10 + $0x3c]] }
  0xd1   :  { %416 = vrot.lane.b32.xlu0 %v414_v61, %s1415_s30  ;;  %331 = vrot.lane.b32.xlu2 %v329_v62, %s1416_s4  ;;  %v871_v61 = vstv %s1583_s8  ;;  %v874_v62 = vstv %s1591_s9  ;;  %v574_v19 = vmul.f32 %v573_v10, %v1594_v18  ;;  %v467_v21 = vmul.f32 %v466_v11, %v1540_v51  ;;  %s1737_s8 = sld [smem:[#allocation10 + $0x1f]] }
  0xd2   :  { %301 = vrot.lane.b32.xlu1 %v299_v63, %s1415_s30  ;;  %v992_v63 = vstv %s1599_s10  ;;  %v872_v1 = vmul.f32 %v871_v61, %v1640_v49  ;;  %v875_v2 = vmul.f32 %v874_v62, %v1642_v50  ;;  %v654_v20 = vstv %s1663_s18  ;;  %s1232_s9 = sld [smem:[#allocation10 + $0x18]] }
  0xd3   :  { %v993_v6 = vmul.f32 %v992_v63, %v1647_v54  ;;  %v470_v24 = vadd.f32 %v469_v15, %v467_v21  ;;  %v561_v25 = vstv %s1668_s19  ;;  %v652_v51 = vstv %s1657_s17  ;;  %s1745_s10 = sld [smem:[#allocation10 + $0x27]] }
  0xd4   :  { %v1679_v9 = vadd.f32 %v875_v2, %v872_v1  ;;  %v559_v27 = vstv %s1684_s21  ;;  %v655_v30 = vmul.f32 %v654_v20, %v1610_v29  ;;  %v562_v31 = vmul.f32 %v561_v25, %v1587_v14  ;;  %s1761_s15 = sld [smem:[#allocation10 + $0x2d]] }
  0xd5   :  { %v1686_v12 = vadd.f32 %v996_v7, %v993_v6  ;;  %v545_v32 = vstv %s1218_s24  ;;  %v653_v34 = vmul.f32 %v652_v51, %v1608_v28  ;;  %v560_v35 = vmul.f32 %v559_v27, %v1594_v18  ;;  %s1242_s16 = sld [smem:[#allocation10 + $0xb]] }
  0xd6   :  { %v546_v36 = vmul.f32 %v545_v32, %v1594_v18  ;;  %v696_v42 = vstv %s1699_s0  ;;  %v589_v43 = vstv %s1703_s1  ;;  %v640_v44 = vstv %s1708_s2  ;;  %s1769_s17 = sld [smem:[#allocation10 + $0x13]] }
  0xd7   :  { %v656_v37 = vadd.f32 %v655_v30, %v653_v34  ;;  %v563_v39 = vadd.f32 %v562_v31, %v560_v35  ;;  %v694_v45 = vstv %s1697_s26  ;;  %v697_v48 = vmul.f32 %v696_v42, %v1610_v29  ;;  %s1771_s18 = sld [smem:[#allocation10 + $0x44]] }
  0xd8   :  { %v590_v53 = vmul.f32 %v589_v43, %v1587_v14  ;;  %v638_v58 = vstv %s1228_s28  ;;  %v641_v59 = vmul.f32 %v640_v44, %v1610_v29  ;;  %v695_v60 = vmul.f32 %v694_v45, %v1608_v28  ;;  %s1775_s19 = sld [smem:[#allocation10 + $0x51]] }
  0xd9   :  { %458 = vrot.lane.b32.xlu0 %v456_v22, %s1412_s22  ;;  %361 = vrot.lane.b32.xlu2 %v359_v23, %s1417_s13  ;;  %v518_v22 = vmul.f32 %v517_v16, %v1594_v18  ;;  %v577_v23 = vadd.f32 %v576_v13, %v574_v19  ;;  %v639_v62 = vmul.f32 %v638_v58, %v1608_v28  ;;  %v775_v1 = vstv %s1723_s5  ;;  %s1785_s21 = sld [smem:[#allocation10 + $0x20]] }
  0xda   :  { %402 = vrot.lane.b32.xlu1 %v400_v26, %s1414_s25  ;;  %v547_v26 = vstv %s1677_s20  ;;  %v698_v63 = vadd.f32 %v697_v48, %v695_v60  ;;  %v682_v2 = vstv %s1727_s6  ;;  %v668_v3 = vstv %s1732_s7  ;;  %s1780_s20 = sld [smem:[#allocation10 + $0x4a]] }
  0xdb   :  { %v521_v47 = vadd.f32 %v520_v17, %v518_v22  ;;  %v548_v33 = vmul.f32 %v547_v26, %v1587_v14  ;;  %v642_v14 = vadd.f32 %v641_v59, %v639_v62  ;;  %v776_v6 = vmul.f32 %v775_v1, %v1633_v41  ;;  %s1246_s24 = sld [smem:[#allocation10 + $0x19]] }
  0xdc   :  { %v683_v7 = vmul.f32 %v682_v2, %v1610_v29  ;;  %v666_v8 = vstv %s1232_s9  ;;  %v669_v10 = vmul.f32 %v668_v3, %v1610_v29  ;;  %v817_v21 = vstv %s1747_s11  ;;  %s1793_s26 = sld [smem:[#allocation10 + $0x28]] }
  0xdd   :  { %v549_v40 = vadd.f32 %v548_v33, %v546_v36  ;;  %v667_v15 = vmul.f32 %v666_v8, %v1608_v28  ;;  %v710_v22 = vstv %s1751_s12  ;;  %v818_v20 = vmul.f32 %v817_v21, %v1633_v41  ;;  %s1795_s0 = sld [smem:[#allocation10 + $0x59]] }
  0xde   :  { %v711_v25 = vmul.f32 %v710_v22, %v1610_v29  ;;  %v759_v26 = vstv %s1242_s16  ;;  %v896_v34 = vstv %s1771_s18  ;;  %v803_v35 = vstv %s1775_s19  ;;  %s1799_s1 = sld [smem:[#allocation10 + $0x5f]] }
  0xdf   :  { %v670_v19 = vadd.f32 %v669_v10, %v667_v15  ;;  %v760_v31 = vmul.f32 %v759_v26, %v1627_v38  ;;  %s1804_s2 = sld [smem:[#allocation10 + $0x3d]] }
  0xe0   :  { %v789_v36 = vstv %s1780_s20  ;;  %s1256_s28 = sld [smem:[#allocation10 + $0xc]] }
  0xe1   :  { %537 = vrot.lane.b32.xlu0 %v535_v46, %s1415_s30  ;;  %444 = vrot.lane.b32.xlu2 %v442_v0, %s1416_s4  ;;  %v587_v46 = vstv %s1713_s27  ;;  %s1809_s27 = sld [smem:[#allocation10 + $0x2e]]  ;;  %v787_v42 = vstv %s1246_s24  ;;  %v790_v43 = vmul.f32 %v789_v36, %v1633_v41  ;;  %s1420_s24 = smov 125  }
  0xe2   :  { %430 = vrot.lane.b32.xlu1 %v428_v4, %s1413_s23  ;;  %v588_v61 = vmul.f32 %v587_v46, %v1594_v18  ;;  %v773_v18 = vstv %s1721_s29  ;;  %v680_v4 = vstv %s1737_s8  ;;  %v788_v46 = vmul.f32 %v787_v42, %v1627_v38  ;;  %s1817_s29 = sld [smem:[#allocation10 + $0x14]] }
  0xe3   :  { %v774_v11 = vmul.f32 %v773_v18, %v1627_v38  ;;  %v681_v13 = vmul.f32 %v680_v4, %v1608_v28  ;;  %s1819_s5 = sld [smem:[#allocation10 + $0x45]]  ;;  %v938_v59 = vstv %s1795_s0  ;;  %v936_v62 = vstv %s1793_s26  ;;  %s1421_s26 = smov 124  }
  0xe4   :  { %v591_v0 = vadd.f32 %v590_v53, %v588_v61  ;;  %v791_v58 = vadd.f32 %v790_v43, %v788_v46  ;;  %v831_v60 = vstv %s1799_s1  ;;  %s1823_s6 = sld [smem:[#allocation10 + $0x52]]  ;;  %v937_v3 = vmul.f32 %v936_v62, %v1640_v49  ;;  %s1422_s0 = smov 123  }
  0xe5   :  { %v777_v16 = vadd.f32 %v776_v6, %v774_v11  ;;  %v684_v17 = vadd.f32 %v683_v7, %v681_v13  ;;  %v882_v61 = vstv %s1804_s2  ;;  %s1828_s7 = sld [smem:[#allocation10 + $0x4b]]  ;;  %s1423_s1 = smov 122  }
  0xe6   :  { %s1833_s8 = sld [smem:[#allocation10 + $0x21]]  ;;  %v880_v1 = vstv %s1256_s28  ;;  %v883_v2 = vmul.f32 %v882_v61, %v1642_v50  ;;  %s1170_s28 = sshll.u32 %s1959_s3, 4  ;;  %s1171_s28 = int_to_ptr.hbm [resolvable:$true] %s1170_s28 }
  0xe7   :  { %s1260_s9 = sld [smem:[#allocation10 + $0x1a]]  ;;  %v881_v4 = vmul.f32 %v880_v1, %v1640_v49 }
  0xe8   :  { %s1843_s11 = sld [smem:[#allocation10 + $0x5a]] }
  0xe9   :  { %579 = vrot.lane.b32.xlu0 %v577_v23, %s1412_s22  ;;  %472 = vrot.lane.b32.xlu2 %v470_v24, %s1417_s13  ;;  %v761_v23 = vstv %s1756_s14  ;;  %v815_v24 = vstv %s1745_s10  ;;  %s1841_s10 = sld [smem:[#allocation10 + $0x29]] }
  0xea   :  { %523 = vrot.lane.b32.xlu1 %v521_v47, %s1414_s25  ;;  %v708_v47 = vstv %s1761_s15  ;;  %v762_v51 = vmul.f32 %v761_v23, %v1633_v41  ;;  %v816_v27 = vmul.f32 %v815_v24, %v1627_v38  ;;  %v1017_v8 = vstv %s1819_s5  ;;  %s1847_s12 = sld [smem:[#allocation10 + $0x60]] }
  0xeb   :  { %v709_v30 = vmul.f32 %v708_v47, %v1608_v28  ;;  %v894_v28 = vstv %s1769_s17  ;;  %v924_v10 = vstv %s1823_s6  ;;  %v910_v11 = vstv %s1828_s7  ;;  %s1852_s14 = sld [smem:[#allocation10 + $0x3e]]  ;;  %s1425_s6 = smov 2  }
  0xec   :  { %v819_v32 = vadd.f32 %v818_v20, %v816_v27  ;;  %v763_v29 = vadd.f32 %v762_v51, %v760_v31  ;;  %v895_v44 = vmul.f32 %v894_v28, %v1640_v49  ;;  %v922_v13 = vstv %s1833_s8  ;;  %s1266_s15 = sld [smem:[#allocation10 + $0x2f]] }
  0xed   :  { %v712_v33 = vadd.f32 %v711_v25, %v709_v30  ;;  %v1018_v15 = vmul.f32 %v1017_v8, %v1649_v55  ;;  %s1270_s16 = sld [smem:[#allocation10 + $0xd]]  ;;  %v923_v22 = vmul.f32 %v922_v13, %v1640_v49 }
  0xee   :  { %v1059_v25 = vstv %s1843_s11  ;;  %s1277_s17 = sld [smem:[#allocation10 + $0x53]] }
  0xef   :  { %s1275_s18 = sld [smem:[#allocation10 + $0x4c]]  ;;  %v1057_v27 = vstv %s1841_s10 }
  0xf0   :  { %v952_v26 = vstv %s1847_s12  ;;  %s1276_s19 = sld [smem:[#allocation10 + $0x22]] }
  0xf1   :  { %658 = vrot.lane.b32.xlu0 %v656_v37, %s1415_s30  ;;  %565 = vrot.lane.b32.xlu2 %v563_v39, %s1416_s4  ;;  %v801_v37 = vstv %s1785_s21  ;;  %v897_v39 = vmul.f32 %v896_v34, %v1642_v50  ;;  %v1003_v51 = vstv %s1852_s14  ;;  %s1274_s20 = sld [smem:[#allocation10 + $0x1b]] }
  0xf2   :  { %551 = vrot.lane.b32.xlu1 %v549_v40, %s1413_s23  ;;  %v804_v40 = vmul.f32 %v803_v35, %v1633_v41  ;;  %v802_v45 = vmul.f32 %v801_v37, %v1627_v38  ;;  %v950_v30 = vstv %s1266_s15  ;;  %v1004_v34 = vmul.f32 %v1003_v51, %v1649_v55  ;;  %s1280_s21 = sld [smem:[#allocation10 + $0x30]] }
  0xf3   :  { %v898_v48 = vadd.f32 %v897_v39, %v895_v44  ;;  %v1058_v35 = vmul.f32 %v1057_v27, %v1647_v54  ;;  %v951_v36 = vmul.f32 %v950_v30, %v1640_v49 }
  0xf4   :  { %v805_v53 = vadd.f32 %v804_v40, %v802_v45  ;;  %v1045_v42 = vstv %s1277_s17 }
  0xf5   :  { %v1031_v43 = vstv %s1275_s18  ;;  %v1046_v45 = vmul.f32 %v1045_v42, %v1649_v55 }
  0xf7   :  { %v1029_v46 = vstv %s1274_s20 }
  0xf8   :  { %v1071_v62 = vstv %s1280_s21 }
  0xf9   :  { %700 = vrot.lane.b32.xlu0 %v698_v63, %s1412_s22  ;;  %593 = vrot.lane.b32.xlu2 %v591_v0, %s1417_s13  ;;  %v829_v63 = vstv %s1809_s27  ;;  %v939_v0 = vmul.f32 %v938_v59, %v1642_v50 }
  0xfa   :  { %644 = vrot.lane.b32.xlu1 %v642_v14, %s1414_s25  ;;  %v832_v14 = vmul.f32 %v831_v60, %v1633_v41  ;;  %v830_v18 = vmul.f32 %v829_v63, %v1627_v38  ;;  %v884_v41 = vadd.f32 %v883_v2, %v881_v4  ;;  %v1015_v38 = vstv %s1817_s29  ;;  %v271_v4 = vld [vmem:[#allocation5] sm:$0xf]  ;;  %s1424_s29 = smov [#allocation13]  }
  0xfb   :  { %v940_v6 = vadd.f32 %v939_v0, %v937_v3  ;;  %v1016_v21 = vmul.f32 %v1015_v38, %v1647_v54  ;;  %v1072_v0 = vmul.f32 %v1071_v62, %v1647_v54  ;;  %s1168_s5 = sshll.u32 %s1424_s29, 4  ;;  %s1169_s5 = int_to_ptr.vmem [resolvable:$true] %s1168_s5 }
  0xfc   :  { %v833_v7 = vadd.f32 %v832_v14, %v830_v18 }
  0xfd   :  { %v1019_v24 = vadd.f32 %v1018_v15, %v1016_v21 }
 0x101   :  { %779 = vrot.lane.b32.xlu0 %v777_v16, %s1415_s30  ;;  %686 = vrot.lane.b32.xlu2 %v684_v17, %s1416_s4  ;;  %v925_v16 = vmul.f32 %v924_v10, %v1642_v50  ;;  %v908_v17 = vstv %s1260_s9 }
 0x102   :  { %672 = vrot.lane.b32.xlu1 %v670_v19, %s1413_s23  ;;  %v911_v19 = vmul.f32 %v910_v11, %v1642_v50  ;;  %v909_v23 = vmul.f32 %v908_v17, %v1640_v49  ;;  %v1032_v49 = vmul.f32 %v1031_v43, %v1649_v55 }
 0x103   :  { %v926_v47 = vadd.f32 %v925_v16, %v923_v22 }
 0x104   :  { %v912_v20 = vadd.f32 %v911_v19, %v909_v23 }
 0x109   :  { %821 = vrot.lane.b32.xlu0 %v819_v32, %s1412_s22  ;;  %714 = vrot.lane.b32.xlu2 %v712_v33, %s1417_s13  ;;  %v1060_v32 = vmul.f32 %v1059_v25, %v1649_v55  ;;  %v953_v33 = vmul.f32 %v952_v26, %v1642_v50  ;;  %v1043_v50 = vstv %s1276_s19 }
 0x10a   :  { %765 = vrot.lane.b32.xlu1 %v763_v29, %s1414_s25  ;;  %v1001_v29 = vstv %s1270_s16 }
 0x10b   :  { %v1002_v28 = vmul.f32 %v1001_v29, %v1647_v54  ;;  %v1061_v37 = vadd.f32 %v1060_v32, %v1058_v35  ;;  %v954_v39 = vadd.f32 %v953_v33, %v951_v36 }
 0x10d   :  { %v1005_v40 = vadd.f32 %v1004_v34, %v1002_v28 }
 0x111   :  { %900 = vrot.lane.b32.xlu0 %v898_v48, %s1415_s30  ;;  %807 = vrot.lane.b32.xlu2 %v805_v53, %s1416_s4  ;;  %v1044_v48 = vmul.f32 %v1043_v50, %v1647_v54  ;;  %v1030_v53 = vmul.f32 %v1029_v46, %v1647_v54 }
 0x112   :  { %793 = vrot.lane.b32.xlu1 %v791_v58, %s1413_s23 }
 0x113   :  { %v1047_v58 = vadd.f32 %v1046_v45, %v1044_v48  ;;  %v1033_v59 = vadd.f32 %v1032_v49, %v1030_v53 }
 0x119   :  { %942 = vrot.lane.b32.xlu0 %v940_v6, %s1412_s22  ;;  %835 = vrot.lane.b32.xlu2 %v833_v7, %s1417_s13  ;;  %v268_v6 = vld [vmem:[#allocation4] sm:$0xf] }
 0x11a   :  { %886 = vrot.lane.b32.xlu1 %v884_v41, %s1414_s25 }
 0x121   :  { %1021 = vrot.lane.b32.xlu0 %v1019_v24, %s1415_s30  ;;  %928 = vrot.lane.b32.xlu2 %v926_v47, %s1416_s4  ;;  %s1281_s30 = sld [smem:[#allocation10 + $0x61]] }
 0x122   :  { %914 = vrot.lane.b32.xlu1 %v912_v20, %s1413_s23 }
 0x123   :  { %v1870_v31 = vpop.permute.xlu2 %316 }
 0x124   :  { %v318_v13 = vrot.slane %v1870_v31, 2 }
 0x126   :  { %v320_v23 = vsel %vm319_vm1, %v1870_v31, %v318_v13 }
 0x127   :  { %v1073_v60 = vstv %s1281_s30 }
 0x128   :  { %v1074_v63 = vmul.f32 %v1073_v60, %v1649_v55 }
 0x129   :  { %1063 = vrot.lane.b32.xlu0 %v1061_v37, %s1412_s22  ;;  %956 = vrot.lane.b32.xlu2 %v954_v39, %s1417_s13  ;;  %s1185_s22 = sld [smem:[#allocation10 + $0x31]] }
 0x12a   :  { %1007 = vrot.lane.b32.xlu1 %v1005_v40, %s1414_s25  ;;  %s266_s25 = sld [smem:[#allocation10]]  ;;  %v1075_v14 = vadd.f32 %v1074_v63, %v1072_v0 }
 0x12b   :  { %v332_v44 = vpop.permute.xlu2 %331 }
 0x12c   :  { %v333_v19 = vrot.slane %v332_v44, 2 }
 0x12e   :  { %v335_v20 = vsel %vm334_vm3, %v332_v44, %v333_v19 }
 0x12f   :  { %v272_v18 = vstv %s1185_s22 }
 0x130   :  { %v269_v7 = vstv %s266_s25  ;;  %v273_v8 = vmul.f32 %v272_v18, %v271_v4 }
 0x131   :  { %1049 = vrot.lane.b32.xlu2 %v1047_v58, %s1416_s4  ;;  %v270_v10 = vmul.f32 %v269_v7, %v268_v6  ;;  %s1419_s4 = smov 126  }
 0x132   :  { %1035 = vrot.lane.b32.xlu1 %v1033_v59, %s1413_s23  ;;  %s1418_s23 = smov 127  }
 0x133   :  { %v362_v61 = vpop.permute.xlu2 %361  ;;  %v274_v38 = vadd.f32 %v273_v8, %v270_v10 }
 0x134   :  { %v363_v25 = vrot.slane %v362_v61, 2 }
 0x136   :  { %v365_v29 = vsel %vm364_vm5, %v362_v61, %v363_v25 }
 0x13a   :  { %1077 = vrot.lane.b32.xlu1 %v1075_v14, %s1417_s13 }
 0x13b   :  { %v347_v1 = vpop.permute.xlu0 %346  ;;  %v445_v2 = vpop.permute.xlu2 %444 }
 0x13c   :  { %v287_v3 = vpop.permute.xlu1 %286  ;;  %v348_v24 = vrot.slane %v347_v1, 2  ;;  %v446_v40 = vrot.slane %v445_v2, 2 }
 0x13d   :  { %v288_v41 = vrot.slane %v287_v3, 2 }
 0x13e   :  { %v350_v30 = vsel %vm349_vm4, %v347_v1, %v348_v24  ;;  %v447_v49 = vsel %vm334_vm3, %v445_v2, %v446_v40 }
 0x13f   :  { %v290_v55 = vsel %vm289_vm15, %v287_v3, %v288_v41 }
 0x140   :  { %v292_v16 = vadd.f32 %v290_v55, %v274_v38 }
 0x143   :  { %v417_v11 = vpop.permute.xlu0 %416  ;;  %v473_v17 = vpop.permute.xlu2 %472 }
 0x144   :  { %v302_v54 = vpop.permute.xlu1 %301  ;;  %v418_v36 = vrot.slane %v417_v11, 2  ;;  %v474_v48 = vrot.slane %v473_v17, 2 }
 0x145   :  { %v303_v15 = vrot.slane %v302_v54, 2 }
 0x146   :  { %v419_v42 = vsel %vm304_vm0, %v417_v11, %v418_v36  ;;  %v475_v62 = vsel %vm364_vm5, %v473_v17, %v474_v48 }
 0x147   :  { %v305_v21 = vsel %vm304_vm0, %v302_v54, %v303_v15 }
 0x148   :  { %v307_v22 = vadd.f32 %v305_v21, %v292_v16 }
 0x14a   :  { %v322_v47 = vadd.f32 %v320_v23, %v307_v22 }
 0x14b   :  { %v459_v26 = vpop.permute.xlu0 %458  ;;  %v566_v31 = vpop.permute.xlu2 %565 }
 0x14c   :  { %v337_v51 = vadd.f32 %v335_v20, %v322_v47  ;;  %v403_v27 = vpop.permute.xlu1 %402  ;;  %v460_v44 = vrot.slane %v459_v26, 2  ;;  %v567_v41 = vrot.slane %v566_v31, 2 }
 0x14d   :  { %v404_v32 = vrot.slane %v403_v27, 2 }
 0x14e   :  { %v352_v33 = vadd.f32 %v350_v30, %v337_v51  ;;  %v461_v59 = vsel %vm349_vm4, %v459_v26, %v460_v44 }
 0x14f   :  { %v405_v34 = vsel %vm289_vm15, %v403_v27, %v404_v32 }
 0x150   :  { %v367_v35 = vadd.f32 %v365_v29, %v352_v33  ;;  %v407_v28 = vadd.f32 %v405_v34, %v1644_v52 }
 0x152   :  { %375 = vst [vmem:[#allocation1] ss:$4 sm:$0xff] %v367_v35  ;;  %v421_v50 = vadd.f32 %v419_v42, %v407_v28 }
 0x153   :  { %v538_v37 = vpop.permute.xlu0 %537  ;;  %v594_v53 = vpop.permute.xlu2 %593 }
 0x154   :  { %v431_v39 = vpop.permute.xlu1 %430  ;;  %v539_v2 = vrot.slane %v538_v37, 2  ;;  %v595_v17 = vrot.slane %v594_v53, 2 }
 0x155   :  { %v432_v43 = vrot.slane %v431_v39, 2 }
 0x156   :  { %v540_v8 = vsel %vm304_vm0, %v538_v37, %v539_v2  ;;  %v596_v47 = vsel %vm364_vm5, %v594_v53, %v595_v17 }
 0x157   :  { %v433_v45 = vsel %vm319_vm1, %v431_v39, %v432_v43 }
 0x158   :  { %v435_v46 = vadd.f32 %v433_v45, %v421_v50 }
 0x159   :  { %v1906_v1 = vld.sshfl [vmem:[#allocation1] sm:$0xff pattern:$0x73625140]  ;;  %v1908_v3 = vld.sshfl [vmem:[#allocation1 + $0x8] sm:$0xff pattern:$0x73625140] }
 0x15a   :  { %v449_v58 = vadd.f32 %v447_v49, %v435_v46 }
 0x15b   :  { %v580_v60 = vpop.permute.xlu0 %579  ;;  %v687_v6 = vpop.permute.xlu2 %686 }
 0x15c   :  { %v463_v52 = vadd.f32 %v461_v59, %v449_v58  ;;  %v524_v61 = vpop.permute.xlu1 %523  ;;  %v581_v55 = vrot.slane %v580_v60, 2  ;;  %v688_v29 = vrot.slane %v687_v6, 2 }
 0x15d   :  { %v525_v63 = vrot.slane %v524_v61, 2 }
 0x15e   :  { %v477_v0 = vadd.f32 %v475_v62, %v463_v52  ;;  %v582_v21 = vsel %vm349_vm4, %v580_v60, %v581_v55 }
 0x15f   :  { %v526_v14 = vsel %vm289_vm15, %v524_v61, %v525_v63 }
 0x160   :  { %486 = vst [vmem:[#allocation1] ss:$4 sm:$0xff] %v477_v0  ;;  %v528_v18 = vadd.f32 %v526_v14, %v1651_v56  ;;  %v568_v56 = vsel %vm334_vm3, %v566_v31, %v567_v41 }
 0x162   :  { %v542_v11 = vadd.f32 %v540_v8, %v528_v18 }
 0x163   :  { %v659_v4 = vpop.permute.xlu0 %658  ;;  %v715_v25 = vpop.permute.xlu2 %714 }
 0x164   :  { %v552_v7 = vpop.permute.xlu1 %551  ;;  %v660_v27 = vrot.slane %v659_v4, 2  ;;  %v716_v50 = vrot.slane %v715_v25, 2 }
 0x165   :  { %v553_v10 = vrot.slane %v552_v7, 2 }
 0x166   :  { %v661_v34 = vsel %vm304_vm0, %v659_v4, %v660_v27  ;;  %v717_v48 = vsel %vm364_vm5, %v715_v25, %v716_v50 }
 0x167   :  { %v554_v38 = vsel %vm319_vm1, %v552_v7, %v553_v10  ;;  %v489_v54 = vld.sshfl [vmem:[#allocation1 + $0x10] sm:$0xff pattern:$0x73625140]  ;;  %v488_v13 = vld.sshfl [vmem:[#allocation1 + $0x8] sm:$0xff pattern:$0x73625140] }
 0x168   :  { %v556_v15 = vadd.f32 %v554_v38, %v542_v11  ;;  %494 = vrot.lane.b32.xlu0 %v489_v54, %s1418_s23  ;;  %492 = vrot.lane.b32.xlu2 %v488_v13, %s1418_s23  ;;  %v487_v16 = vld.sshfl [vmem:[#allocation1] sm:$0xff pattern:$0x73625140] }
 0x169   :  { %490 = vrot.lane.b32.xlu1 %v487_v16, %s1418_s23 }
 0x16a   :  { %v570_v19 = vadd.f32 %v568_v56, %v556_v15 }
 0x16b   :  { %v701_v22 = vpop.permute.xlu0 %700  ;;  %v808_v40 = vpop.permute.xlu2 %807 }
 0x16c   :  { %v584_v23 = vadd.f32 %v582_v21, %v570_v19  ;;  %v645_v24 = vpop.permute.xlu1 %644  ;;  %v702_v31 = vrot.slane %v701_v22, 2  ;;  %v809_v0 = vrot.slane %v808_v40, 2 }
 0x16d   :  { %v646_v20 = vrot.slane %v645_v24, 2 }
 0x16e   :  { %v598_v26 = vadd.f32 %v596_v47, %v584_v23  ;;  %v703_v45 = vsel %vm349_vm4, %v701_v22, %v702_v31  ;;  %v810_v11 = vsel %vm334_vm3, %v808_v40, %v809_v0 }
 0x16f   :  { %v647_v51 = vsel %vm289_vm15, %v645_v24, %v646_v20 }
 0x170   :  { %607 = vst [vmem:[#allocation1] ss:$4 sm:$0xff] %v598_v26  ;;  %v649_v30 = vadd.f32 %v647_v51, %v1653_v57  ;;  %v689_v57 = vsel %vm334_vm3, %v687_v6, %v688_v29 }
 0x172   :  { %v663_v36 = vadd.f32 %v661_v34, %v649_v30 }
 0x173   :  { %v780_v32 = vpop.permute.xlu0 %779  ;;  %v836_v61 = vpop.permute.xlu2 %835 }
 0x174   :  { %v673_v33 = vpop.permute.xlu1 %672  ;;  %v781_v52 = vrot.slane %v780_v32, 2 }
 0x175   :  { %v674_v35 = vrot.slane %v673_v33, 2 }
 0x176   :  { %v782_v14 = vsel %vm304_vm0, %v780_v32, %v781_v52 }
 0x177   :  { %v675_v28 = vsel %vm319_vm1, %v673_v33, %v674_v35  ;;  %v610_v37 = vld.sshfl [vmem:[#allocation1 + $0x10] sm:$0xff pattern:$0x73625140]  ;;  %v609_v39 = vld.sshfl [vmem:[#allocation1 + $0x8] sm:$0xff pattern:$0x73625140] }
 0x178   :  { %v677_v42 = vadd.f32 %v675_v28, %v663_v36  ;;  %615 = vrot.lane.b32.xlu0 %v610_v37, %s1419_s4  ;;  %613 = vrot.lane.b32.xlu2 %v609_v39, %s1419_s4  ;;  %v608_v43 = vld.sshfl [vmem:[#allocation1] sm:$0xff pattern:$0x73625140] }
 0x179   :  { %611 = vrot.lane.b32.xlu1 %v608_v43, %s1419_s4 }
 0x17a   :  { %v691_v44 = vadd.f32 %v689_v57, %v677_v42 }
 0x17b   :  { %v822_v59 = vpop.permute.xlu0 %821  ;;  %v929_v13 = vpop.permute.xlu2 %928 }
 0x17c   :  { %v705_v46 = vadd.f32 %v703_v45, %v691_v44  ;;  %v766_v49 = vpop.permute.xlu1 %765  ;;  %v823_v18 = vrot.slane %v822_v59, 2  ;;  %v930_v20 = vrot.slane %v929_v13, 2 }
 0x17d   :  { %v767_v53 = vrot.slane %v766_v49, 2 }
 0x17e   :  { %v719_v58 = vadd.f32 %v717_v48, %v705_v46  ;;  %v824_v54 = vsel %vm349_vm4, %v822_v59, %v823_v18  ;;  %v931_v31 = vsel %vm334_vm3, %v929_v13, %v930_v20 }
 0x17f   :  { %v768_v60 = vsel %vm289_vm15, %v766_v49, %v767_v53 }
 0x180   :  { %728 = vst [vmem:[#allocation1] ss:$4 sm:$0xff] %v719_v58  ;;  %v770_v62 = vadd.f32 %v768_v60, %v1670_v5  ;;  %v837_v5 = vrot.slane %v836_v61, 2 }
 0x182   :  { %v784_v4 = vadd.f32 %v782_v14, %v770_v62  ;;  %v838_v56 = vsel %vm364_vm5, %v836_v61, %v837_v5 }
 0x183   :  { %v901_v8 = vpop.permute.xlu0 %900  ;;  %v957_v51 = vpop.permute.xlu2 %956 }
 0x184   :  { %v794_v63 = vpop.permute.xlu1 %793  ;;  %v902_v22 = vrot.slane %v901_v8, 2 }
 0x185   :  { %v795_v2 = vrot.slane %v794_v63, 2 }
 0x186   :  { %v903_v25 = vsel %vm304_vm0, %v901_v8, %v902_v22  ;;  %v368_v22 = vld [vmem:[#allocation11] ss:$8 sm:$0x3] }
 0x187   :  { %v796_v6 = vsel %vm319_vm1, %v794_v63, %v795_v2  ;;  %v731_v7 = vld.sshfl [vmem:[#allocation1 + $0x10] sm:$0xff pattern:$0x73625140]  ;;  %v730_v41 = vld.sshfl [vmem:[#allocation1 + $0x8] sm:$0xff pattern:$0x73625140] }
 0x188   :  { %v798_v10 = vadd.f32 %v796_v6, %v784_v4  ;;  %736 = vrot.lane.b32.xlu0 %v731_v7, %s1420_s24  ;;  %734 = vrot.lane.b32.xlu2 %v730_v41, %s1420_s24  ;;  %v729_v55 = vld.sshfl [vmem:[#allocation1] sm:$0xff pattern:$0x73625140] }
 0x189   :  { %732 = vrot.lane.b32.xlu1 %v729_v55, %s1420_s24 }
 0x18a   :  { %v812_v38 = vadd.f32 %v810_v11, %v798_v10 }
 0x18b   :  { %v943_v23 = vpop.permute.xlu0 %942  ;;  %v1050_v45 = vpop.permute.xlu2 %1049 }
 0x18c   :  { %v826_v15 = vadd.f32 %v824_v54, %v812_v38  ;;  %v887_v16 = vpop.permute.xlu1 %886  ;;  %v944_v27 = vrot.slane %v943_v23, 2  ;;  %v1051_v48 = vrot.slane %v1050_v45, 2 }
 0x18d   :  { %v888_v17 = vrot.slane %v887_v16, 2 }
 0x18e   :  { %v840_v19 = vadd.f32 %v838_v56, %v826_v15  ;;  %v945_v28 = vsel %vm349_vm4, %v943_v23, %v944_v27  ;;  %v1052_v14 = vsel %vm334_vm3, %v1050_v45, %v1051_v48 }
 0x18f   :  { %v889_v21 = vsel %vm289_vm15, %v887_v16, %v888_v17 }
 0x190   :  { %849 = vst [vmem:[#allocation1] ss:$4 sm:$0xff] %v840_v19  ;;  %v891_v24 = vadd.f32 %v889_v21, %v1679_v9  ;;  %v958_v9 = vrot.slane %v957_v51, 2  ;;  %v479_v21 = vld [vmem:[#allocation11 + $0x1] ss:$8 sm:$0x3] }
 0x191   :  { %v481_v27 = vperm.slane %v479_v21, 0 }
 0x192   :  { %v905_v30 = vadd.f32 %v903_v25, %v891_v24  ;;  %v959_v42 = vsel %vm364_vm5, %v957_v51, %v958_v9  ;;  %v482_v25 = vperm.slane %v479_v21, 1 }
 0x193   :  { %v1022_v37 = vpop.permute.xlu0 %1021 }
 0x194   :  { %v915_v47 = vpop.permute.xlu1 %914  ;;  %v1023_v44 = vrot.slane %v1022_v37, 2 }
 0x195   :  { %v916_v26 = vrot.slane %v915_v47, 2 }
 0x196   :  { %v1024_v53 = vsel %vm304_vm0, %v1022_v37, %v1023_v44 }
 0x197   :  { %v917_v32 = vsel %vm319_vm1, %v915_v47, %v916_v26  ;;  %v852_v33 = vld.sshfl [vmem:[#allocation1 + $0x10] sm:$0xff pattern:$0x73625140]  ;;  %v851_v29 = vld.sshfl [vmem:[#allocation1 + $0x8] sm:$0xff pattern:$0x73625140] }
 0x198   :  { %v919_v34 = vadd.f32 %v917_v32, %v905_v30  ;;  %857 = vrot.lane.b32.xlu0 %v852_v33, %s1421_s26  ;;  %855 = vrot.lane.b32.xlu2 %v851_v29, %s1421_s26  ;;  %v850_v35 = vld.sshfl [vmem:[#allocation1] sm:$0xff pattern:$0x73625140]  ;;  %v600_v47 = vld [vmem:[#allocation11 + $0x2] ss:$8 sm:$0x3] }
 0x199   :  { %853 = vrot.lane.b32.xlu1 %v850_v35, %s1421_s26  ;;  %v371_v26 = vperm.slane %v368_v22, 1  ;;  %v721_v30 = vld [vmem:[#allocation11 + $0x3] ss:$8 sm:$0x3]  ;;  %v603_v33 = vperm.slane %v600_v47, 1  ;;  %v370_v29 = vperm.slane %v368_v22, 0 }
 0x19a   :  { %v933_v36 = vadd.f32 %v931_v31, %v919_v34  ;;  %v602_v35 = vperm.slane %v600_v47, 0  ;;  %v842_v31 = vld [vmem:[#allocation11 + $0x4] ss:$8 sm:$0x3] }
 0x19b   :  { %v1064_v59 = vpop.permute.xlu0 %1063  ;;  %v381_v37 = vmul.f32 %v1908_v3, %v371_v26  ;;  %v845_v45 = vperm.slane %v842_v31, 1 }
 0x19c   :  { %v947_v39 = vadd.f32 %v945_v28, %v933_v36  ;;  %v1008_v40 = vpop.permute.xlu1 %1007  ;;  %v1065_v2 = vrot.slane %v1064_v59, 2  ;;  %v724_v28 = vperm.slane %v721_v30, 1 }
 0x19d   :  { %v1009_v43 = vrot.slane %v1008_v40, 2 }
 0x19e   :  { %v961_v57 = vadd.f32 %v959_v42, %v947_v39  ;;  %v1066_v4 = vsel %vm349_vm4, %v1064_v59, %v1065_v2  ;;  %v723_v42 = vperm.slane %v721_v30, 0  ;;  %v1084_v2 = vld [vmem:[#allocation11 + $0x6] ss:$8 sm:$0x3]  ;;  %vm1151_vm4 = vcmask 1040384  }
 0x19f   :  { %v1010_v50 = vsel %vm289_vm15, %v1008_v40, %v1009_v43  ;;  %v963_v43 = vld [vmem:[#allocation11 + $0x5] ss:$8 sm:$0x3] }
 0x1a0   :  { %970 = vst [vmem:[#allocation1] ss:$4 sm:$0xff] %v961_v57  ;;  %v1012_v46 = vadd.f32 %v1010_v50, %v1686_v12 }
 0x1a2   :  { %v1026_v60 = vadd.f32 %v1024_v53, %v1012_v46 }
 0x1a4   :  { %v1036_v49 = vpop.permute.xlu1 %1035 }
 0x1a5   :  { %v1037_v58 = vrot.slane %v1036_v49, 2 }
 0x1a7   :  { %v1038_v52 = vsel %vm319_vm1, %v1036_v49, %v1037_v58  ;;  %v973_v61 = vld.sshfl [vmem:[#allocation1 + $0x10] sm:$0xff pattern:$0x73625140]  ;;  %v972_v62 = vld.sshfl [vmem:[#allocation1 + $0x8] sm:$0xff pattern:$0x73625140]  ;;  %v380_v49 = vmul.f32 %v1906_v1, %v370_v29 }
 0x1a8   :  { %v1040_v63 = vadd.f32 %v1038_v52, %v1026_v60  ;;  %978 = vrot.lane.b32.xlu0 %v973_v61, %s1422_s0  ;;  %976 = vrot.lane.b32.xlu2 %v972_v62, %s1422_s0  ;;  %v971_v0 = vld.sshfl [vmem:[#allocation1] sm:$0xff pattern:$0x73625140]  ;;  %v844_v58 = vperm.slane %v842_v31, 0  ;;  %v966_v61 = vperm.slane %v963_v43, 1 }
 0x1a9   :  { %974 = vrot.lane.b32.xlu1 %v971_v0, %s1422_s0 }
 0x1aa   :  { %v1054_v12 = vadd.f32 %v1052_v14, %v1040_v63  ;;  %v965_v14 = vperm.slane %v963_v43, 0 }
 0x1ac   :  { %v1078_v18 = vpop.permute.xlu1 %1077  ;;  %v1068_v7 = vadd.f32 %v1066_v4, %v1054_v12 }
 0x1ad   :  { %v1079_v6 = vrot.slane %v1078_v18, 2 }
 0x1af   :  { %v1080_v41 = vsel %vm364_vm5, %v1078_v18, %v1079_v6 }
 0x1b0   :  { %v1082_v8 = vadd.f32 %v1080_v41, %v1068_v7 }
 0x1b2   :  { %1091 = vst [vmem:[#allocation1] ss:$4 sm:$0xff] %v1082_v8  ;;  %v1087_v8 = vperm.slane %v1084_v2, 1 }
 0x1b9   :  { %v1094_v10 = vld.sshfl [vmem:[#allocation1 + $0x10] sm:$0xff pattern:$0x73625140]  ;;  %v1093_v55 = vld.sshfl [vmem:[#allocation1 + $0x8] sm:$0xff pattern:$0x73625140] }
 0x1ba   :  { %1099 = vrot.lane.b32.xlu0 %v1094_v10, %s1423_s1  ;;  %1097 = vrot.lane.b32.xlu2 %v1093_v55, %s1423_s1  ;;  %v1092_v11 = vld.sshfl [vmem:[#allocation1] sm:$0xff pattern:$0x73625140] }
 0x1bb   :  { %1095 = vrot.lane.b32.xlu1 %v1092_v11, %s1423_s1  ;;  %v1086_v11 = vperm.slane %v1084_v2, 0 }
 0x1c2   :  { %v493_v5 = vpop.permute.xlu2 %492 }
 0x1d2   :  { %v614_v13 = vpop.permute.xlu2 %613 }
 0x1da   :  { %v495_v38 = vpop.permute.xlu0 %494 }
 0x1db   :  { %v491_v54 = vpop.permute.xlu1 %490  ;;  %v498_v51 = vsel %vm496_vm6, %v493_v5, %v495_v38 }
 0x1dc   :  { %v497_v32 = vsel %vm496_vm6, %v491_v54, %v493_v5  ;;  %v502_v9 = vmul.f32 %v498_v51, %v482_v25 }
 0x1dd   :  { %v501_v39 = vmul.f32 %v497_v32, %v481_v27 }
 0x1de   :  { %v504_v60 = vadd.f32 %v502_v9, %v381_v37 }
 0x1df   :  { %v503_v62 = vadd.f32 %v501_v39, %v380_v49 }
 0x1e2   :  { %v735_v56 = vpop.permute.xlu2 %734 }
 0x1ea   :  { %v616_v15 = vpop.permute.xlu0 %615 }
 0x1eb   :  { %v612_v16 = vpop.permute.xlu1 %611  ;;  %v619_v34 = vsel %vm617_vm7, %v614_v13, %v616_v15 }
 0x1ec   :  { %v618_v36 = vsel %vm617_vm7, %v612_v16, %v614_v13  ;;  %v623_v57 = vmul.f32 %v619_v34, %v603_v33 }
 0x1ed   :  { %v622_v48 = vmul.f32 %v618_v36, %v602_v35 }
 0x1ee   :  { %v625_v12 = vadd.f32 %v623_v57, %v504_v60 }
 0x1ef   :  { %v624_v4 = vadd.f32 %v622_v48, %v503_v62 }
 0x1f2   :  { %v856_v23 = vpop.permute.xlu2 %855 }
 0x1fa   :  { %v737_v17 = vpop.permute.xlu0 %736 }
 0x1fb   :  { %v733_v19 = vpop.permute.xlu1 %732  ;;  %v740_v40 = vsel %vm738_vm8, %v735_v56, %v737_v17 }
 0x1fc   :  { %v739_v50 = vsel %vm738_vm8, %v733_v19, %v735_v56  ;;  %v744_v52 = vmul.f32 %v740_v40, %v724_v28 }
 0x1fd   :  { %v743_v63 = vmul.f32 %v739_v50, %v723_v42  ;;  %v1158_v42 = vlaneseq }
 0x1fe   :  { %v746_v7 = vadd.f32 %v744_v52, %v625_v12 }
 0x1ff   :  { %v745_v10 = vadd.f32 %v743_v63, %v624_v4  ;;  %vm1160_vm6 = vcmp.lt.s32.totalorder %v1158_v42, 256 }
 0x202   :  { %v977_v44 = vpop.permute.xlu2 %976 }
 0x20a   :  { %v858_v24 = vpop.permute.xlu0 %857 }
 0x20b   :  { %v854_v20 = vpop.permute.xlu1 %853  ;;  %v861_v53 = vsel %vm859_vm9, %v856_v23, %v858_v24 }
 0x20c   :  { %v860_v3 = vsel %vm859_vm9, %v854_v20, %v856_v23  ;;  %v865_v18 = vmul.f32 %v861_v53, %v845_v45 }
 0x20d   :  { %v864_v6 = vmul.f32 %v860_v3, %v844_v58 }
 0x20e   :  { %v867_v5 = vadd.f32 %v865_v18, %v746_v7 }
 0x20f   :  { %v866_v13 = vadd.f32 %v864_v6, %v745_v10 }
 0x214   :  { %v1098_v38 = vpop.permute.xlu2 %1097 }
 0x21a   :  { %v979_v46 = vpop.permute.xlu0 %978 }
 0x21b   :  { %v975_v59 = vpop.permute.xlu1 %974  ;;  %v982_v0 = vsel %vm980_vm10, %v977_v44, %v979_v46 }
 0x21c   :  { %v981_v1 = vsel %vm980_vm10, %v975_v59, %v977_v44  ;;  %v986_v41 = vmul.f32 %v982_v0, %v966_v61 }
 0x21d   :  { %v985_v55 = vmul.f32 %v981_v1, %v965_v14 }
 0x21e   :  { %v988_v56 = vadd.f32 %v986_v41, %v867_v5 }
 0x21f   :  { %v987_v21 = vadd.f32 %v985_v55, %v866_v13 }
 0x22c   :  { %v1100_v54 = vpop.permute.xlu0 %1099 }
 0x22d   :  { %v1103_v15 = vsel %vm1101_vm11, %v1098_v38, %v1100_v54  ;;  %v1096_v16 = vpop.permute.xlu1 %1095 }
 0x22e   :  { %v1107_v17 = vmul.f32 %v1103_v15, %v1087_v8  ;;  %v1102_v19 = vsel %vm1101_vm11, %v1096_v16, %v1098_v38 }
 0x22f   :  { %v1106_v22 = vmul.f32 %v1102_v19, %v1086_v11 }
 0x230   :  { %v1109_v23 = vadd.f32 %v1107_v17, %v988_v56 }
 0x231   :  { %v1108_v24 = vadd.f32 %v1106_v22, %v987_v21 }
 0x232   :  { %v1283_v47 = vmul.f32 -1.442695, %v1109_v23 }
 0x233   :  { %v1282_v20 = vmul.f32 -1.442695, %v1108_v24 }
 0x234   :  { %1305 = vpow2.f32 %v1283_v47 }
 0x235   :  { %1307 = vpow2.f32 %v1282_v20 }
 0x23a   :  { %v1306_v25 = vpop.eup %1305 }
 0x23b   :  { %v1308_v26 = vpop.eup %1307  ;;  %v1117_v51 = vadd.f32 1.0, %v1306_v25 }
 0x23c   :  { %v1116_v27 = vadd.f32 1.0, %v1308_v26 }
 0x23d   :  { %1309 = vrcp.f32 %v1117_v51  ;;  %v1144_v31 = vand.u32 2147483648, %v1117_v51  ;;  %v1142_v36 = vand.u32 2147483647, %v1117_v51  ;;  %vm1138_vm14 = vweird.f32 %v1117_v51 }
 0x23e   :  { %1311 = vrcp.f32 %v1116_v27  ;;  %v1129_v37 = vand.u32 2147483648, %v1116_v27  ;;  %v1127_v39 = vand.u32 2147483647, %v1116_v27  ;;  %vm1123_vm15 = vweird.f32 %v1116_v27 }
 0x23f   :  { %v1145_v57 = vor.u32 1.1754944e-38, %v1144_v31  ;;  %vm1143_vm3 = vcmp.eq.f32.partialorder %v1142_v36, 8.507059e+37 }
 0x240   :  { %v1130_v45 = vor.u32 1.1754944e-38, %v1129_v37  ;;  %vm1128_vm5 = vcmp.eq.f32.partialorder %v1127_v39, 8.507059e+37 }
 0x243   :  { %v1310_v30 = vpop.eup %1309 }
 0x244   :  { %v1312_v32 = vpop.eup %1311  ;;  %v1134_v33 = vmul.f32 %v1310_v30, %v1117_v51  ;;  %vm1139_vm12 = vweird.f32 %v1310_v30 }
 0x245   :  { %v1119_v29 = vmul.f32 %v1312_v32, %v1116_v27  ;;  %vm1124_vm13 = vweird.f32 %v1312_v32  ;;  %vm1140_vm0 = vmor %vm1138_vm14, %vm1139_vm12 }
 0x246   :  { %v1135_v34 = vsub.f32 1.0, %v1134_v33  ;;  %vm1125_vm1 = vmor %vm1123_vm15, %vm1124_vm13 }
 0x247   :  { %v1120_v35 = vsub.f32 1.0, %v1119_v29 }
 0x248   :  { %v1136_v9 = vmul.f32 %v1310_v30, %v1135_v34 }
 0x249   :  { %v1121_v28 = vmul.f32 %v1312_v32, %v1120_v35 }
 0x24a   :  { %v1137_v40 = vadd.f32 %v1310_v30, %v1136_v9 }
 0x24b   :  { %v1122_v43 = vadd.f32 %v1312_v32, %v1121_v28 }
 0x24c   :  { %v1141_v50 = vsel %vm1140_vm0, %v1310_v30, %v1137_v40 }
 0x24d   :  { %v1126_v44 = vsel %vm1125_vm1, %v1312_v32, %v1122_v43  ;;  %v1146_v46 = vsel %vm1143_vm3, %v1145_v57, %v1141_v50 }
 0x24e   :  { %v1150_v49 = vrot.slane %v1146_v46, 7  ;;  %v1131_v48 = vsel %vm1128_vm5, %v1130_v45, %v1126_v44 }
 0x250   :  { %v1152_v53 = vsel %vm1151_vm4, %v1131_v48, %v1150_v49  ;;  %v1154_v58 = vsel %vm159_vm2, %v1131_v48, %v1150_v49 }
 0x251   :  { %v1155_v59 = vrot.slane %v1154_v58, 1  ;;  %1162 = vst.msk [vmem:[#allocation13] sm:$0x3] %vm1160_vm6, %v1152_v53 }
 0x253   :  { %1163 = vst.msk [vmem:[#allocation13 + $0x2] sm:$0x3] %vm1160_vm6, %v1155_v59 }
 0x254   :  { %1176 = dma.vmem_to_hbm [thread:$0]  %s1169_s5, 64, %s1171_s28, [#allocation8], %s1417_s13, %s1417_s13, %s1425_s6  }
 0x255   :  { %1403 = dma.done.wait [#allocation8], 64  }
 0x256   :  { %1404 = vsyncadd [#allocation8], 4294967232 }
 0x257   :  { %1181 = vsyncpa [#allocation7], 1 }
 0x258   :  { %1182 = vsyncpa [#allocation12], 1 }
 0x259   :  { %1183 = vsyncpa [#allocation8], 1 }
 0x25a   :  { %1184 = vsyncpa [#allocation9], 1 }

</bundles_post_ra>
